<compile_context>
chip_gen: v7x
topology: tpu7x:2x2x1
jax: 0.10.0
libtpu: 0.0.40
codegen_flags: <defaults>
</compile_context>

<pallas_src>
import jax
import jax.numpy as jnp
from jax.experimental import pallas as pl
from jax.experimental.pallas import tpu as pltpu

D_IN  = 64              # per-view input feature width (embeddingGenerator input)
EMB   = 256             # per-view embedding width (4 * 256 = 1024 -> Linear(1024, 256))
HID   = 256             # classifier hidden width
NCLS  = 2               # output classes
NVIEW = 4               # t2, t3, t4, t8
D_CAT = NVIEW * D_IN    # 256  (views concatenated along lanes)
E_CAT = NVIEW * EMB     # 1024 (concatenated embedding width)


def _round_up(x, m):
    return (x + m - 1) // m * m


def multiview_kernel(t2_ref, t3_ref, t4_ref, t8_ref,
                     we_ref, be_ref, w1_ref, b1_ref, w2d_ref, scal_ref,
                     out_ref):
    # --- lane-dense input slab: views concatenated along the lane axis --------
    xs = jnp.concatenate(
        [t2_ref[...], t3_ref[...], t4_ref[...], t8_ref[...]],
        axis=1).astype(jnp.bfloat16)                       # (tb, 256) bf16

    # --- embeddingGenerator on all four views in ONE K=256 MXU dot ------------
    # we_ref is block-diagonal (256, 1024): column block v = view v @ We.
    e = jnp.dot(xs, we_ref[...], preferred_element_type=jnp.float32)
    e = jnp.maximum(e + be_ref[...], 0.0)                  # (tb, 1024) f32, ReLU

    # --- Linear(1024, 256): single K=1024 dot ---------------------------------
    h = jnp.dot(e.astype(jnp.bfloat16), w1_ref[...],
                preferred_element_type=jnp.float32) + b1_ref[...]   # (tb, 256)

    # --- PReLU (single shared alpha, nn.PReLU() default) — scalar from SMEM ---
    alpha = scal_ref[0]
    h = jnp.where(h >= 0.0, h, alpha * h)

    # --- folded Linear(256, 2) head: d = logit1 - logit0 ----------------------
    d = jnp.dot(h.astype(jnp.bfloat16), w2d_ref[...],
                preferred_element_type=jnp.float32) + scal_ref[1]   # (tb, 1)

    # --- 2-class log_softmax, purely elementwise -------------------------------
    # out0 = -softplus(d), out1 = d - softplus(d); stable softplus form
    # (log(1+x) with x in (0,1] — log1p gain would be cosmetic here).
    sp = jnp.maximum(d, 0.0) + jnp.log(1.0 + jnp.exp(-jnp.abs(d)))
    lane = jax.lax.broadcasted_iota(jnp.int32, out_ref.shape, 1)
    out_ref[...] = jnp.where(lane == 0, -sp, d - sp)


def multiview_forward(t2, t3, t4, t8, tM, tB, params, tile_b=1024):
    # tM / tB accepted for API parity with the PyTorch forward; unused there too.
    del tM, tB
    B = t2.shape[0]

    # Adaptive tile: minimize padding waste (tb = round_up(cdiv(B, nblk), 8)).
    # On v7x, pass tile_b <= B/2 so nblk >= 2 and both TensorCores are used.
    tile_b = max(8, _round_up(tile_b, 8))
    nblk = -(-B // tile_b)
    tb = _round_up(-(-B // nblk), 8)
    B_pad = tb * nblk

    def pad(x):
        x = x.astype(jnp.float32)
        return x if B_pad == B else jnp.pad(x, ((0, B_pad - B), (0, 0)))

    t2p, t3p, t4p, t8p = pad(t2), pad(t3), pad(t4), pad(t8)

    # Block-diagonal embedding weight (one-time, tiny): kron(I_4, We) -> (256, 1024).
    we_bd = jnp.kron(jnp.eye(NVIEW, dtype=jnp.float32),
                     params["we"]).astype(jnp.bfloat16)
    be_cat = jnp.tile(params["be"], (1, NVIEW))            # (1, 1024) f32
    w1 = params["w1"].astype(jnp.bfloat16)                 # (1024, 256)
    b1 = params["b1"]                                      # (1, 256) f32
    w2d = (params["w2"][:, 1:2] - params["w2"][:, 0:1]).astype(jnp.bfloat16)  # (256,1)
    b2d = params["b2"][0, 1] - params["b2"][0, 0]
    scalars = jnp.stack([params["alpha"][0, 0], b2d]).astype(jnp.float32)     # (2,)

    flops = 2 * B_pad * (D_CAT * E_CAT + E_CAT * HID + HID * 1)
    bytes_accessed = (NVIEW * B_pad * D_IN * 4
                      + (we_bd.size + w1.size + w2d.size) * 2
                      + (E_CAT + HID + 2) * 4
                      + B_pad * NCLS * 4)

    view_spec = pl.BlockSpec((tb, D_IN), lambda i: (i, 0))
    # Note: constant-operand specs keep default double-buffering; at this
    # footprint (~1.1 MiB) it is negligible against the 32 MiB budget.
    out = pl.pallas_call(
        multiview_kernel,
        out_shape=jax.ShapeDtypeStruct((B_pad, NCLS), jnp.float32),
        grid_spec=pltpu.PrefetchScalarGridSpec(
            num_scalar_prefetch=0,
            grid=(nblk,),
            in_specs=[
                view_spec, view_spec, view_spec, view_spec,          # t2..t8
                pl.BlockSpec((D_CAT, E_CAT), lambda i: (0, 0)),      # We (block-diag)
                pl.BlockSpec((1, E_CAT),     lambda i: (0, 0)),      # be (tiled)
                pl.BlockSpec((E_CAT, HID),   lambda i: (0, 0)),      # W1
                pl.BlockSpec((1, HID),       lambda i: (0, 0)),      # b1
                pl.BlockSpec((HID, 1),       lambda i: (0, 0)),      # w2[:,1]-w2[:,0]
                pl.BlockSpec(memory_space=pltpu.MemorySpace.SMEM),   # [alpha, b2d]
            ],
            out_specs=pl.BlockSpec((tb, NCLS), lambda i: (i, 0)),
        ),
        compiler_params=pltpu.CompilerParams(
            dimension_semantics=("parallel",),
            vmem_limit_bytes=32 * 1024 * 1024),
        cost_estimate=pl.CostEstimate(
            flops=flops, transcendentals=2 * B_pad,
            bytes_accessed=bytes_accessed),
    )(t2p, t3p, t4p, t8p, we_bd, be_cat, w1, b1, w2d, scalars)

    return out[:B]


def init_params(key):
    ks = jax.random.split(key, 6)

    def u(k, shape, fan_in):
        bound = 1.0 / float(fan_in) ** 0.5
        return jax.random.uniform(k, shape, jnp.float32, -bound, bound)

    return {
        "we":    u(ks[0], (D_IN, EMB), D_IN),                # embeddingGenerator weight
        "be":    u(ks[1], (1, EMB), D_IN),                   # embeddingGenerator bias
        "w1":    u(ks[2], (NVIEW * EMB, HID), NVIEW * EMB),  # Linear(1024, 256)
        "b1":    u(ks[3], (1, HID), NVIEW * EMB),
        "alpha": jnp.full((1, 1), 0.25, jnp.float32),        # nn.PReLU() default
        "w2":    u(ks[4], (HID, NCLS), HID),                 # Linear(256, 2)
        "b2":    u(ks[5], (1, NCLS), HID),
    }


def reference_forward(t2, t3, t4, t8, params):
    # Mirrors the kernel's bf16 input/weight rounding (f32 accumulation) so the
    # comparison tolerance stays tight; head kept in unfolded two-logit form.
    bf = lambda x: x.astype(jnp.bfloat16).astype(jnp.float32)
    we, w1, w2 = bf(params["we"]), bf(params["w1"]), bf(params["w2"])

    def embed(x):
        return jnp.maximum(bf(x) @ we + params["be"], 0.0)

    final_view = jnp.concatenate(
        [embed(t2), embed(t3), embed(t4), embed(t8)], axis=1)
    h = bf(final_view) @ w1 + params["b1"]
    a = params["alpha"][0, 0]
    h = jnp.where(h >= 0.0, h, a * h)
    logits = bf(h) @ w2 + params["b2"]
    return jax.nn.log_softmax(logits, axis=1)


if __name__ == "__main__":
    key = jax.random.PRNGKey(0)
    k_params, k2, k3, k4, k8, kM, kB = jax.random.split(key, 7)

    B = 8
    params = init_params(k_params)
    mk = lambda k: jax.random.normal(k, (B, D_IN), jnp.float32)
    t2, t3, t4, t8 = mk(k2), mk(k3), mk(k4), mk(k8)
    tM, tB_in = mk(kM), mk(kB)   # unused by forward (kept for signature parity)

    out = jax.block_until_ready(multiview_forward(t2, t3, t4, t8, tM, tB_in, params))
    ref = reference_forward(t2, t3, t4, t8, params)
    assert out.shape == (B, NCLS)
    assert jnp.allclose(out, ref, atol=1e-2, rtol=1e-2), "mismatch vs JAX reference"
    assert jnp.allclose(jnp.sum(jnp.exp(out), axis=1), 1.0, atol=1e-3)

    # Exercise the batch-grid + padding path (grid > 1, B not a tile multiple).
    B2 = 20
    k2b, k3b, k4b, k8b = jax.random.split(jax.random.PRNGKey(1), 4)
    mk2 = lambda k: jax.random.normal(k, (B2, D_IN), jnp.float32)
    u2, u3, u4, u8 = mk2(k2b), mk2(k3b), mk2(k4b), mk2(k8b)
    out2 = jax.block_until_ready(
        multiview_forward(u2, u3, u4, u8, u2, u3, params, tile_b=8))
    ref2 = reference_forward(u2, u3, u4, u8, params)
    assert out2.shape == (B2, NCLS)
    assert jnp.allclose(out2, ref2, atol=1e-2, rtol=1e-2), "gridded path mismatch"

    print("KERNEL_OK")
</pallas_src>

<mosaic_0001>
module attributes {stable_mosaic.version = 11 : i64} {
  func.func @multiview_kernel(%arg0: i32, %arg1: memref<8x64xf32, #tpu.memory_space<vmem>>, %arg2: memref<8x64xf32, #tpu.memory_space<vmem>>, %arg3: memref<8x64xf32, #tpu.memory_space<vmem>>, %arg4: memref<8x64xf32, #tpu.memory_space<vmem>>, %arg5: memref<256x1024xbf16, #tpu.memory_space<vmem>>, %arg6: memref<1x1024xf32, #tpu.memory_space<vmem>>, %arg7: memref<1024x256xbf16, #tpu.memory_space<vmem>>, %arg8: memref<1x256xf32, #tpu.memory_space<vmem>>, %arg9: memref<256x1xbf16, #tpu.memory_space<vmem>>, %arg10: memref<2xf32, #tpu.memory_space<smem>>, %arg11: memref<8x2xf32, #tpu.memory_space<vmem>>) attributes {dimension_semantics = [#tpu.dimension_semantics<parallel>], iteration_bounds = array<i64: 1>, scalar_prefetch = 0 : i64, scratch_operands = 0 : i64, tpu.core_type = #tpu.core_type<tc>, window_params = [{transform_indices = @transform_0, window_bounds = array<i64: 8, 64>}, {transform_indices = @transform_1, window_bounds = array<i64: 8, 64>}, {transform_indices = @transform_2, window_bounds = array<i64: 8, 64>}, {transform_indices = @transform_3, window_bounds = array<i64: 8, 64>}, {pipeline_mode = #tpu.pipeline_mode<synchronous>, transform_indices = @transform_4, window_bounds = array<i64: 256, 1024>}, {pipeline_mode = #tpu.pipeline_mode<synchronous>, transform_indices = @transform_5, window_bounds = array<i64: 1, 1024>}, {pipeline_mode = #tpu.pipeline_mode<synchronous>, transform_indices = @transform_6, window_bounds = array<i64: 1024, 256>}, {pipeline_mode = #tpu.pipeline_mode<synchronous>, transform_indices = @transform_7, window_bounds = array<i64: 1, 256>}, {pipeline_mode = #tpu.pipeline_mode<synchronous>, transform_indices = @transform_8, window_bounds = array<i64: 256, 1>}, {transform_indices = @transform_9, window_bounds = array<i64: 2>}, {transform_indices = @transform_10, window_bounds = array<i64: 8, 2>}]} {
    %c0 = arith.constant 0 : index
    %c0_0 = arith.constant 0 : index
    %0 = vector.load %arg1[%c0, %c0_0] : memref<8x64xf32, #tpu.memory_space<vmem>>, vector<8x64xf32>
    %c0_1 = arith.constant 0 : index
    %c0_2 = arith.constant 0 : index
    %1 = vector.load %arg2[%c0_1, %c0_2] : memref<8x64xf32, #tpu.memory_space<vmem>>, vector<8x64xf32>
    %c0_3 = arith.constant 0 : index
    %c0_4 = arith.constant 0 : index
    %2 = vector.load %arg3[%c0_3, %c0_4] : memref<8x64xf32, #tpu.memory_space<vmem>>, vector<8x64xf32>
    %c0_5 = arith.constant 0 : index
    %c0_6 = arith.constant 0 : index
    %3 = vector.load %arg4[%c0_5, %c0_6] : memref<8x64xf32, #tpu.memory_space<vmem>>, vector<8x64xf32>
    %4 = tpu.concatenate %0, %1, %2, %3 in 1 : vector<8x64xf32>, vector<8x64xf32>, vector<8x64xf32>, vector<8x64xf32> -> vector<8x256xf32>
    %5 = arith.truncf %4 : vector<8x256xf32> to vector<8x256xbf16>
    %c0_7 = arith.constant 0 : index
    %c0_8 = arith.constant 0 : index
    %6 = vector.load %arg5[%c0_7, %c0_8] : memref<256x1024xbf16, #tpu.memory_space<vmem>>, vector<256x1024xbf16>
    %cst = arith.constant dense<0.000000e+00> : vector<8x1024xf32>
    %7 = tpu.matmul %5, %6, %cst {dimension_numbers = #tpu.dot_dimension_numbers<[1], [0], [0], [1], [0, 0, 1, 1], [], []>} : vector<8x256xbf16>, vector<256x1024xbf16>, vector<8x1024xf32> -> vector<8x1024xf32>
    %c0_9 = arith.constant 0 : index
    %c0_10 = arith.constant 0 : index
    %8 = vector.load %arg6[%c0_9, %c0_10] : memref<1x1024xf32, #tpu.memory_space<vmem>>, vector<1x1024xf32>
    %9 = vector.broadcast %8 : vector<1x1024xf32> to vector<8x1024xf32>
    %10 = arith.addf %7, %9 : vector<8x1024xf32>
    %cst_11 = arith.constant 0.000000e+00 : f32
    %11 = vector.broadcast %cst_11 : f32 to vector<8x1024xf32>
    %12 = arith.maximumf %10, %11 : vector<8x1024xf32>
    %13 = arith.truncf %12 : vector<8x1024xf32> to vector<8x1024xbf16>
    %c0_12 = arith.constant 0 : index
    %c0_13 = arith.constant 0 : index
    %14 = vector.load %arg7[%c0_12, %c0_13] : memref<1024x256xbf16, #tpu.memory_space<vmem>>, vector<1024x256xbf16>
    %cst_14 = arith.constant dense<0.000000e+00> : vector<8x256xf32>
    %15 = tpu.matmul %13, %14, %cst_14 {dimension_numbers = #tpu.dot_dimension_numbers<[1], [0], [0], [1], [0, 0, 1, 1], [], []>} : vector<8x1024xbf16>, vector<1024x256xbf16>, vector<8x256xf32> -> vector<8x256xf32>
    %c0_15 = arith.constant 0 : index
    %c0_16 = arith.constant 0 : index
    %16 = vector.load %arg8[%c0_15, %c0_16] : memref<1x256xf32, #tpu.memory_space<vmem>>, vector<1x256xf32>
    %17 = vector.broadcast %16 : vector<1x256xf32> to vector<8x256xf32>
    %18 = arith.addf %15, %17 : vector<8x256xf32>
    %c0_17 = arith.constant 0 : index
    %19 = memref.load %arg10[%c0_17] : memref<2xf32, #tpu.memory_space<smem>>
    %cst_18 = arith.constant 0.000000e+00 : f32
    %20 = vector.broadcast %cst_18 : f32 to vector<8x256xf32>
    %21 = arith.cmpf oge, %18, %20 : vector<8x256xf32>
    %22 = vector.broadcast %19 : f32 to vector<8x256xf32>
    %23 = arith.mulf %22, %18 : vector<8x256xf32>
    %24 = arith.select %21, %18, %23 : vector<8x256xi1>, vector<8x256xf32>
    %25 = arith.truncf %24 : vector<8x256xf32> to vector<8x256xbf16>
    %c0_19 = arith.constant 0 : index
    %c0_20 = arith.constant 0 : index
    %26 = vector.load %arg9[%c0_19, %c0_20] : memref<256x1xbf16, #tpu.memory_space<vmem>>, vector<256x1xbf16>
    %cst_21 = arith.constant dense<0.000000e+00> : vector<8x1xf32>
    %27 = tpu.matmul %25, %26, %cst_21 {dimension_numbers = #tpu.dot_dimension_numbers<[1], [0], [0], [1], [0, 0, 1, 1], [], []>} : vector<8x256xbf16>, vector<256x1xbf16>, vector<8x1xf32> -> vector<8x1xf32>
    %c1 = arith.constant 1 : index
    %28 = memref.load %arg10[%c1] : memref<2xf32, #tpu.memory_space<smem>>
    %29 = vector.broadcast %28 : f32 to vector<8x1xf32>
    %30 = arith.addf %27, %29 : vector<8x1xf32>
    %cst_22 = arith.constant 0.000000e+00 : f32
    %31 = vector.broadcast %cst_22 : f32 to vector<8x1xf32>
    %32 = arith.maximumf %30, %31 : vector<8x1xf32>
    %33 = math.absf %30 : vector<8x1xf32>
    %cst_23 = arith.constant 0.000000e+00 : f32
    %34 = vector.broadcast %cst_23 : f32 to vector<8x1xf32>
    %35 = arith.subf %34, %33 : vector<8x1xf32>
    %36 = math.exp %35 : vector<8x1xf32>
    %cst_24 = arith.constant 1.000000e+00 : f32
    %37 = vector.broadcast %cst_24 : f32 to vector<8x1xf32>
    %38 = arith.addf %37, %36 : vector<8x1xf32>
    %39 = math.log %38 : vector<8x1xf32>
    %40 = arith.addf %32, %39 : vector<8x1xf32>
    %41 = tpu.iota {dimensions = array<i32: 1>} : vector<8x2xi32>
    %c0_i32 = arith.constant 0 : i32
    %42 = vector.broadcast %c0_i32 : i32 to vector<8x2xi32>
    %43 = arith.cmpi eq, %41, %42 : vector<8x2xi32>
    %cst_25 = arith.constant 0.000000e+00 : f32
    %44 = vector.broadcast %cst_25 : f32 to vector<8x1xf32>
    %45 = arith.subf %44, %40 : vector<8x1xf32>
    %46 = arith.subf %30, %40 : vector<8x1xf32>
    %47 = vector.shape_cast %45 : vector<8x1xf32> to vector<8x1xf32>
    %48 = vector.broadcast %47 : vector<8x1xf32> to vector<8x2xf32>
    %49 = vector.shape_cast %46 : vector<8x1xf32> to vector<8x1xf32>
    %50 = vector.broadcast %49 : vector<8x1xf32> to vector<8x2xf32>
    %51 = arith.select %43, %48, %50 : vector<8x2xi1>, vector<8x2xf32>
    %c0_26 = arith.constant 0 : index
    %c0_27 = arith.constant 0 : index
    %52 = vector.load %arg11[%c0_26, %c0_27] : memref<8x2xf32, #tpu.memory_space<vmem>>, vector<8x2xf32>
    tpu.vector_store %arg11[%c0_26, %c0_27], %51 {strides = array<i32>} : memref<8x2xf32, #tpu.memory_space<vmem>>, vector<8x2xf32>,
    return
  }
  func.func @transform_0(%arg0: i32) -> (i32, i32) {
    %c0_i32 = arith.constant 0 : i32
    %c0_i32_0 = arith.constant 0 : i32
    return %arg0, %c0_i32 : i32, i32
  }
  func.func @transform_1(%arg0: i32) -> (i32, i32) {
    %c0_i32 = arith.constant 0 : i32
    %c0_i32_0 = arith.constant 0 : i32
    return %arg0, %c0_i32 : i32, i32
  }
  func.func @transform_2(%arg0: i32) -> (i32, i32) {
    %c0_i32 = arith.constant 0 : i32
    %c0_i32_0 = arith.constant 0 : i32
    return %arg0, %c0_i32 : i32, i32
  }
  func.func @transform_3(%arg0: i32) -> (i32, i32) {
    %c0_i32 = arith.constant 0 : i32
    %c0_i32_0 = arith.constant 0 : i32
    return %arg0, %c0_i32 : i32, i32
  }
  func.func @transform_4(%arg0: i32) -> (i32, i32) {
    %c0_i32 = arith.constant 0 : i32
    %c0_i32_0 = arith.constant 0 : i32
    %c0_i32_1 = arith.constant 0 : i32
    return %c0_i32, %c0_i32_0 : i32, i32
  }
  func.func @transform_5(%arg0: i32) -> (i32, i32) {
    %c0_i32 = arith.constant 0 : i32
    %c0_i32_0 = arith.constant 0 : i32
    %c0_i32_1 = arith.constant 0 : i32
    return %c0_i32, %c0_i32_0 : i32, i32
  }
  func.func @transform_6(%arg0: i32) -> (i32, i32) {
    %c0_i32 = arith.constant 0 : i32
    %c0_i32_0 = arith.constant 0 : i32
    %c0_i32_1 = arith.constant 0 : i32
    return %c0_i32, %c0_i32_0 : i32, i32
  }
  func.func @transform_7(%arg0: i32) -> (i32, i32) {
    %c0_i32 = arith.constant 0 : i32
    %c0_i32_0 = arith.constant 0 : i32
    %c0_i32_1 = arith.constant 0 : i32
    return %c0_i32, %c0_i32_0 : i32, i32
  }
  func.func @transform_8(%arg0: i32) -> (i32, i32) {
    %c0_i32 = arith.constant 0 : i32
    %c0_i32_0 = arith.constant 0 : i32
    %c0_i32_1 = arith.constant 0 : i32
    return %c0_i32, %c0_i32_0 : i32, i32
  }
  func.func @transform_9(%arg0: i32) -> i32 {
    %c0_i32 = arith.constant 0 : i32
    %c0_i32_0 = arith.constant 0 : i32
    return %c0_i32 : i32
  }
  func.func @transform_10(%arg0: i32) -> (i32, i32) {
    %c0_i32 = arith.constant 0 : i32
    %c0_i32_0 = arith.constant 0 : i32
    return %arg0, %c0_i32 : i32, i32
  }
}

</mosaic_0001>

<bundles_post_ra>
// kernel: tpu_custom_call.1
= control target key start
LH: loop header
LB: loop body
LE: loop exit
PB: predicated region body
PF: predicated region fallthrough
CT: control target
= control target key end

     0   :  { %15 = vsyncpa [#allocation3], 0  ;;  %s3043_s0 = inlined_call_operand.vmem [shape: f32[8,64], index: 0, kind: input, shape index: {}]   ;;  %s3044_s1 = inlined_call_operand.vmem [shape: f32[8,64], index: 1, kind: input, shape index: {}]   ;;  %s3045_s2 = inlined_call_operand.vmem [shape: f32[8,64], index: 2, kind: input, shape index: {}]   ;;  %s3046_s3 = inlined_call_operand.vmem [shape: f32[8,64], index: 3, kind: input, shape index: {}]   ;;  %s3047_s4 = inlined_call_operand.hbm [shape: bf16[256,1024], index: 4, kind: input, shape index: {}]   ;;  %s3048_s5 = inlined_call_operand.vmem [shape: f32[1,1024], index: 5, kind: input, shape index: {}]   ;;  %s3049_s6 = inlined_call_operand.hbm [shape: bf16[1024,256], index: 6, kind: input, shape index: {}]   ;;  %s3050_s7 = inlined_call_operand.vmem [shape: f32[1,256], index: 7, kind: input, shape index: {}]   ;;  %s3051_s8 = inlined_call_operand.vmem [shape: bf16[256,1], index: 8, kind: input, shape index: {}]   ;;  %s3052_s9 = inlined_call_operand.vmem [shape: f32[2], index: 9, kind: input, shape index: {}]   ;;  %s3053_s10 = inlined_call_operand.vmem [shape: f32[8,2], index: 10, kind: output, shape index: {}]  }
   0x1   :  { %16 = vsyncpa [#allocation6], 0 }
   0x2   :  { %17 = vsyncpa [#allocation4], 0  ;;  %s2841_s13 = smov [#allocation2]   ;;  %s2779_s17 = scalar_lea.hbm %s3047_s4, 16384 }
   0x3   :  { %s31_s14 = sshll.u32 %s2841_s13, 4  ;;  %p2780_p0 = scmp.ne.s32.totalorder %s3047_s4, %s2779_s17  ;;  %s32_s14 = int_to_ptr.vmem [resolvable:$true] %s31_s14 }
   0x4   :  { %p2783_p1 = scmp.lt.u32.totalorder %s2779_s17, %s3047_s4 }
   0x6   :  { %p2785_p2 = pnand %p2783_p1, %p2780_p0 }
   0x8   :  { %2788 = shalt.err (!%p2785_p2)
}
   0x9   :  { %s2789_s22 = scalar_lea.vmem %s32_s14, 16384  ;;  %p2794_p4 = scmp.lt.s32.totalorder %s32_s14, %s32_s14 }
   0xa   :  { %p2790_p3 = scmp.ne.s32.totalorder %s32_s14, %s2789_s22  ;;  %p2795_p5 = scmp.lt.s32.totalorder %s2789_s22, %s2789_s22 }
   0xc   :  { %p2796_p6 = por %p2795_p5, %p2794_p4 }
   0xe   :  { %p2797_p7 = pnand %p2796_p6, %p2790_p3 }
  0x10   :  { %2800 = shalt.err (!%p2797_p7)
}
  0x11   :  { %s2842_s23 = smov 512   ;;  %s2843_s24 = smov 32  }
  0x12   :  { %37 = dma.hbm_to_vmem [thread:$0]  %s3047_s4, 16384, %s32_s14, [#allocation3], %s2842_s23, %s2842_s23, %s2843_s24  }
  0x13   :  { %s2844_s27 = smov [#allocation5]   ;;  %s2801_s11 = scalar_lea.hbm %s3049_s6, 16384 }
  0x14   :  { %s45_s28 = sshll.u32 %s2844_s27, 4  ;;  %p2802_p8 = scmp.ne.s32.totalorder %s3049_s6, %s2801_s11  ;;  %s46_s28 = int_to_ptr.vmem [resolvable:$true] %s45_s28 }
  0x15   :  { %p2805_p9 = scmp.lt.u32.totalorder %s2801_s11, %s3049_s6 }
  0x17   :  { %p2807_p10 = pnand %p2805_p9, %p2802_p8 }
  0x19   :  { %2810 = shalt.err (!%p2807_p10)
}
  0x1a   :  { %s2811_s17 = scalar_lea.vmem %s46_s28, 16384  ;;  %p2816_p12 = scmp.lt.s32.totalorder %s46_s28, %s46_s28 }
  0x1b   :  { %p2812_p11 = scmp.ne.s32.totalorder %s46_s28, %s2811_s17  ;;  %p2817_p13 = scmp.lt.s32.totalorder %s2811_s17, %s2811_s17 }
  0x1d   :  { %p2818_p0 = por %p2817_p13, %p2816_p12 }
  0x1f   :  { %p2819_p1 = pnand %p2818_p0, %p2812_p11 }
  0x21   :  { %2822 = shalt.err (!%p2819_p1)
}
  0x22   :  { %s2845_s4 = smov 128   ;;  %s2846_s14 = smov 8  }
  0x23   :  { %51 = dma.hbm_to_vmem [thread:$0]  %s3049_s6, 16384, %s46_s28, [#allocation6], %s2845_s4, %s2845_s4, %s2846_s14  }
  0x24   :  { %s62_s22 = sshll.u32 %s3052_s9, 4  ;;  %s63_s22 = int_to_ptr.vmem [resolvable:$true] %s62_s22 }
  0x25   :  { %s2823_s23 = scalar_lea.vmem %s63_s22, 16  ;;  %p2828_p3 = scmp.lt.s32.totalorder %s63_s22, %s63_s22 }
  0x26   :  { %p2824_p2 = scmp.ne.s32.totalorder %s63_s22, %s2823_s23  ;;  %p2829_p4 = scmp.lt.s32.totalorder %s2823_s23, %s2823_s23 }
  0x28   :  { %p2830_p5 = por %p2829_p4, %p2828_p3 }
  0x2a   :  { %p2831_p6 = pnand %p2830_p5, %p2824_p2 }
  0x2c   :  { %2834 = shalt.err (!%p2831_p6)
}
  0x2d   :  { %s2847_s24 = smov [#allocation7]  }
  0x2e   :  { %65 = dma.vmem_to_smem %s63_s22, 16, %s2847_s24, [#allocation4]  }
  0x2f   :  { %2835 = dma.done.wait [#allocation3], 16384  }
  0x30   :  { %2836 = vsyncadd [#allocation3], 4294950912 }
  0x31   :  { %2837 = dma.done.wait [#allocation6], 16384  }
  0x32   :  { %2838 = vsyncadd [#allocation6], 4294950912 }
  0x33   :  { %2839 = dma.done.wait [#allocation4], 16  }
  0x34   :  { %2840 = vsyncadd [#allocation4], 4294967280 }
  0x35   :  { %75 = sfence }
  0x36   :  { %v78_v0 = vld [vmem:[%s3044_s1] sm:$0xff]  ;;  %s2848_s27 = smov 64   ;;  %vm89_vm0 = vcmask 523264   ;;  %s2028_s13 = sld [smem:[#allocation7]]  ;;  %vm2233_vm4 = vcmask 15360  }
  0x37   :  { %v80_v1 = vld [vmem:[%s3046_s3] sm:$0xff] }
  0x38   :  { %v94_v2 = vld [vmem:[#allocation2] sm:$0xff]  ;;  %v2560_v3 = vpack.i.bf16 %v78_v0, %v80_v1  ;;  %v95_v1 = vld [vmem:[#allocation2 + $0x8] sm:$0xff] }
  0x39   :  { %v98_v4 = vld [vmem:[#allocation2 + $0x20] sm:$0xff] }
  0x3a   :  { %v102_v5 = vld [vmem:[#allocation2 + $0x40] sm:$0xff]  ;;  %v2243_v7 = vcombine.high %v94_v2, %v98_v4  ;;  %v2242_v8 = vcombine.low %v94_v2, %v98_v4  ;;  %2561 = vrot.lane.b32.xlu0 %v2560_v3, %s2848_s27  ;;  %v99_v2 = vld [vmem:[#allocation2 + $0x28] sm:$0xff] }
  0x3b   :  { %v106_v6 = vld [vmem:[#allocation2 + $0x60] sm:$0xff] }
  0x3c   :  { %v2251_v9 = vcombine.high %v102_v5, %v106_v6  ;;  %v110_v10 = vld [vmem:[#allocation2 + $0x80] sm:$0xff]  ;;  %904 = vmatprep.subr.bf16.mxu1 %v2243_v7  ;;  %v2250_v12 = vcombine.low %v102_v5, %v106_v6  ;;  %v2245_v5 = vcombine.high %v95_v1, %v99_v2 }
  0x3d   :  { %v114_v11 = vld [vmem:[#allocation2 + $0xa0] sm:$0xff]  ;;  %905 = vmatpush1.bf16.msra.mxu1 %v2242_v8 }
  0x3e   :  { %906 = vmatprep.subr.bf16.mxu1 %v2251_v9  ;;  %v2259_v13 = vcombine.high %v110_v10, %v114_v11  ;;  %v118_v14 = vld [vmem:[#allocation2 + $0xc0] sm:$0xff]  ;;  %v2258_v16 = vcombine.low %v110_v10, %v114_v11  ;;  %v103_v11 = vld [vmem:[#allocation2 + $0x48] sm:$0xff] }
  0x3f   :  { %v122_v15 = vld [vmem:[#allocation2 + $0xe0] sm:$0xff] }
  0x40   :  { %v2267_v17 = vcombine.high %v118_v14, %v122_v15  ;;  %v126_v18 = vld [vmem:[#allocation2 + $0x100] sm:$0xff]  ;;  %v2266_v20 = vcombine.low %v118_v14, %v122_v15 }
  0x41   :  { %907 = vmatpush1.bf16.msra.mxu1 %v2250_v12  ;;  %v130_v19 = vld [vmem:[#allocation2 + $0x120] sm:$0xff]  ;;  %v107_v12 = vld [vmem:[#allocation2 + $0x68] sm:$0xff] }
  0x42   :  { %908 = vmatprep.subr.bf16.mxu1 %v2259_v13  ;;  %v2275_v21 = vcombine.high %v126_v18, %v130_v19  ;;  %v134_v22 = vld [vmem:[#allocation2 + $0x140] sm:$0xff]  ;;  %v2274_v24 = vcombine.low %v126_v18, %v130_v19  ;;  %v2253_v18 = vcombine.high %v103_v11, %v107_v12  ;;  %v111_v19 = vld [vmem:[#allocation2 + $0x88] sm:$0xff] }
  0x43   :  { %v138_v23 = vld [vmem:[#allocation2 + $0x160] sm:$0xff] }
  0x44   :  { %v142_v25 = vld [vmem:[#allocation2 + $0x180] sm:$0xff]  ;;  %v2283_v27 = vcombine.high %v134_v22, %v138_v23  ;;  %v2282_v28 = vcombine.low %v134_v22, %v138_v23  ;;  %v119_v23 = vld [vmem:[#allocation2 + $0xc8] sm:$0xff] }
  0x45   :  { %909 = vmatpush1.bf16.msra.mxu1 %v2258_v16  ;;  %v146_v26 = vld [vmem:[#allocation2 + $0x1a0] sm:$0xff] }
  0x46   :  { %910 = vmatprep.subr.bf16.mxu1 %v2267_v17  ;;  %v150_v29 = vld [vmem:[#allocation2 + $0x1c0] sm:$0xff]  ;;  %v2291_v31 = vcombine.high %v142_v25, %v146_v26  ;;  %v2290_v32 = vcombine.low %v142_v25, %v146_v26  ;;  %v2244_v17 = vcombine.low %v95_v1, %v99_v2  ;;  %v2576_v1 = vld [vmem:[#allocation5 + $0x34] ss:$8 sps:$4 sm:$0xff]   ;;  %v191_v2 = vld [vmem:[#allocation2 + $0x308] sm:$0xff] }
  0x47   :  { %v154_v30 = vld [vmem:[#allocation2 + $0x1e0] sm:$0xff] }
  0x48   :  { %v158_v33 = vld [vmem:[#allocation2 + $0x200] sm:$0xff]  ;;  %v2299_v35 = vcombine.high %v150_v29, %v154_v30  ;;  %v2298_v36 = vcombine.low %v150_v29, %v154_v30 }
  0x49   :  { %911 = vmatpush1.bf16.msra.mxu1 %v2266_v20  ;;  %v162_v34 = vld [vmem:[#allocation2 + $0x220] sm:$0xff]  ;;  %v115_v20 = vld [vmem:[#allocation2 + $0xa8] sm:$0xff] }
  0x4a   :  { %912 = vmatprep.subr.bf16.mxu1 %v2275_v21  ;;  %v166_v37 = vld [vmem:[#allocation2 + $0x240] sm:$0xff]  ;;  %v2307_v39 = vcombine.high %v158_v33, %v162_v34  ;;  %v2306_v40 = vcombine.low %v158_v33, %v162_v34  ;;  %v2252_v21 = vcombine.low %v103_v11, %v107_v12  ;;  %v2261_v22 = vcombine.high %v111_v19, %v115_v20 }
  0x4b   :  { %v170_v38 = vld [vmem:[#allocation2 + $0x260] sm:$0xff]  ;;  %v2260_v25 = vcombine.low %v111_v19, %v115_v20 }
  0x4c   :  { %v174_v41 = vld [vmem:[#allocation2 + $0x280] sm:$0xff]  ;;  %v2315_v43 = vcombine.high %v166_v37, %v170_v38  ;;  %v2314_v44 = vcombine.low %v166_v37, %v170_v38 }
  0x4d   :  { %913 = vmatpush1.bf16.msra.mxu1 %v2274_v24  ;;  %v178_v42 = vld [vmem:[#allocation2 + $0x2a0] sm:$0xff]  ;;  %v123_v24 = vld [vmem:[#allocation2 + $0xe8] sm:$0xff] }
  0x4e   :  { %914 = vmatprep.subr.bf16.mxu1 %v2283_v27  ;;  %v182_v45 = vld [vmem:[#allocation2 + $0x2c0] sm:$0xff]  ;;  %v2323_v47 = vcombine.high %v174_v41, %v178_v42  ;;  %v2322_v48 = vcombine.low %v174_v41, %v178_v42  ;;  %v2269_v26 = vcombine.high %v119_v23, %v123_v24  ;;  %v127_v27 = vld [vmem:[#allocation2 + $0x108] sm:$0xff]  ;;  %v2268_v29 = vcombine.low %v119_v23, %v123_v24 }
  0x4f   :  { %v186_v46 = vld [vmem:[#allocation2 + $0x2e0] sm:$0xff]  ;;  %v219_v23 = vld [vmem:[#allocation2 + $0x3e8] sm:$0xff] }
  0x50   :  { %v190_v49 = vld [vmem:[#allocation2 + $0x300] sm:$0xff]  ;;  %v2331_v51 = vcombine.high %v182_v45, %v186_v46  ;;  %v2330_v52 = vcombine.low %v182_v45, %v186_v46 }
  0x51   :  { %915 = vmatpush1.bf16.msra.mxu1 %v2282_v28  ;;  %v194_v50 = vld [vmem:[#allocation2 + $0x320] sm:$0xff]  ;;  %v131_v28 = vld [vmem:[#allocation2 + $0x128] sm:$0xff] }
  0x52   :  { %916 = vmatprep.subr.bf16.mxu1 %v2291_v31  ;;  %v198_v53 = vld [vmem:[#allocation2 + $0x340] sm:$0xff]  ;;  %v2339_v55 = vcombine.high %v190_v49, %v194_v50  ;;  %v2338_v56 = vcombine.low %v190_v49, %v194_v50  ;;  %v2277_v30 = vcombine.high %v127_v27, %v131_v28  ;;  %v135_v31 = vld [vmem:[#allocation2 + $0x148] sm:$0xff]  ;;  %v2276_v33 = vcombine.low %v127_v27, %v131_v28  ;;  %v2588_v27 = vld [vmem:[#allocation5 + $0x74] ss:$8 sps:$4 sm:$0xff]  }
  0x53   :  { %v202_v54 = vld [vmem:[#allocation2 + $0x360] sm:$0xff]  ;;  %v171_v49 = vld [vmem:[#allocation2 + $0x268] sm:$0xff]  ;;  %v96_v28 = vld [vmem:[#allocation2 + $0x10] sm:$0xff] }
  0x54   :  { %v206_v57 = vld [vmem:[#allocation2 + $0x380] sm:$0xff]  ;;  %v2347_v59 = vcombine.high %v198_v53, %v202_v54  ;;  %v2346_v60 = vcombine.low %v198_v53, %v202_v54  ;;  %v2570_v53 = vld [vmem:[#allocation5 + $0x14] ss:$8 sps:$4 sm:$0xff]   ;;  %v175_v54 = vld [vmem:[#allocation2 + $0x288] sm:$0xff] }
  0x55   :  { %917 = vmatpush1.bf16.msra.mxu1 %v2290_v32  ;;  %v210_v58 = vld [vmem:[#allocation2 + $0x3a0] sm:$0xff]  ;;  %v139_v32 = vld [vmem:[#allocation2 + $0x168] sm:$0xff] }
  0x56   :  { %918 = vmatprep.subr.bf16.mxu1 %v2299_v35  ;;  %v214_v61 = vld [vmem:[#allocation2 + $0x3c0] sm:$0xff]  ;;  %v2355_v63 = vcombine.high %v206_v57, %v210_v58  ;;  %v2354_v0 = vcombine.low %v206_v57, %v210_v58  ;;  %v2285_v34 = vcombine.high %v135_v31, %v139_v32  ;;  %v143_v35 = vld [vmem:[#allocation2 + $0x188] sm:$0xff]  ;;  %v2284_v37 = vcombine.low %v135_v31, %v139_v32 }
  0x57   :  { %v218_v62 = vld [vmem:[#allocation2 + $0x3e0] sm:$0xff] }
  0x58   :  { %v2363_v3 = vcombine.high %v214_v61, %v218_v62  ;;  %v2362_v4 = vcombine.low %v214_v61, %v218_v62  ;;  %v79_v6 = vld [vmem:[%s3045_s2] sm:$0xff]  ;;  %v187_v61 = vld [vmem:[#allocation2 + $0x2e8] sm:$0xff] }
  0x59   :  { %919 = vmatpush1.bf16.msra.mxu1 %v2298_v36  ;;  %v77_v8 = vld [vmem:[%s3043_s0] sm:$0xff]  ;;  %v147_v36 = vld [vmem:[#allocation2 + $0x1a8] sm:$0xff] }
  0x5a   :  { %920 = vmatprep.subr.bf16.mxu1 %v2307_v39  ;;  %v2293_v38 = vcombine.high %v143_v35, %v147_v36  ;;  %v151_v39 = vld [vmem:[#allocation2 + $0x1c8] sm:$0xff]  ;;  %v2292_v41 = vcombine.low %v143_v35, %v147_v36  ;;  %v108_v35 = vld [vmem:[#allocation2 + $0x70] sm:$0xff] }
  0x5b   :  { %v2569_v50 = vld [vmem:[#allocation5] ss:$8 sps:$4 sm:$0xff]  }
  0x5c   :  { %v2575_v62 = vld [vmem:[#allocation5 + $0x20] ss:$8 sps:$4 sm:$0xff]  }
  0x5d   :  { %921 = vmatpush1.bf16.msra.mxu1 %v2306_v40  ;;  %v155_v40 = vld [vmem:[#allocation2 + $0x1e8] sm:$0xff] }
  0x5e   :  { %922 = vmatprep.subr.bf16.mxu1 %v2315_v43  ;;  %v2301_v42 = vcombine.high %v151_v39, %v155_v40  ;;  %v159_v43 = vld [vmem:[#allocation2 + $0x208] sm:$0xff]  ;;  %v2300_v45 = vcombine.low %v151_v39, %v155_v40  ;;  %v2594_v39 = vld [vmem:[#allocation5 + $0x94] ss:$8 sps:$4 sm:$0xff]  }
  0x5f   :  { %v2587_v24 = vld [vmem:[#allocation5 + $0x60] ss:$8 sps:$4 sm:$0xff]   ;;  %v112_v40 = vld [vmem:[#allocation2 + $0x90] sm:$0xff] }
  0x60   :  { %v2593_v36 = vld [vmem:[#allocation5 + $0x80] ss:$8 sps:$4 sm:$0xff]  }
  0x61   :  { %923 = vmatpush1.bf16.msra.mxu1 %v2314_v44  ;;  %v163_v44 = vld [vmem:[#allocation2 + $0x228] sm:$0xff] }
  0x62   :  { %924 = vmatprep.subr.bf16.mxu1 %v2323_v47  ;;  %v2309_v46 = vcombine.high %v159_v43, %v163_v44  ;;  %v2567_v47 = vld [vmem:[#allocation5 + $0x4] ss:$8 sps:$4 sm:$0xff]  }
  0x63   :  { %1864 = vmatprep.subr.bf16.mxu0 %v2567_v47  ;;  %v120_v47 = vld [vmem:[#allocation2 + $0xd0] sm:$0xff] }
  0x64   :  { %1865 = vmatpush1.bf16.msra.mxu0 %v2569_v50 }
  0x65   :  { %925 = vmatpush1.bf16.msra.mxu1 %v2322_v48  ;;  %v167_v48 = vld [vmem:[#allocation2 + $0x248] sm:$0xff]  ;;  %1866 = vmatprep.subr.bf16.mxu0 %v2570_v53  ;;  %v128_v53 = vld [vmem:[#allocation2 + $0x110] sm:$0xff] }
  0x66   :  { %926 = vmatprep.subr.bf16.mxu1 %v2331_v51  ;;  %v2308_v51 = vcombine.low %v159_v43, %v163_v44  ;;  %v2316_v57 = vcombine.low %v167_v48, %v171_v49  ;;  %v2597_v43 = vld [vmem:[#allocation5 + $0xa4] ss:$8 sps:$4 sm:$0xff]  }
  0x69   :  { %927 = vmatpush1.bf16.msra.mxu1 %v2330_v52  ;;  %v2317_v52 = vcombine.high %v167_v48, %v171_v49  ;;  %v124_v48 = vld [vmem:[#allocation2 + $0xf0] sm:$0xff] }
  0x6a   :  { %928 = vmatprep.subr.bf16.mxu1 %v2339_v55  ;;  %v179_v55 = vld [vmem:[#allocation2 + $0x2a8] sm:$0xff]  ;;  %v2600_v49 = vld [vmem:[#allocation5 + $0xb4] ss:$8 sps:$4 sm:$0xff]  }
  0x6b   :  { %v2325_v58 = vcombine.high %v175_v54, %v179_v55 }
  0x6d   :  { %929 = vmatpush1.bf16.msra.mxu1 %v2338_v56  ;;  %v2572_v56 = vld [vmem:[#allocation5 + $0x10] ss:$8 sps:$4 sm:$0xff]  }
  0x6e   :  { %930 = vmatprep.subr.bf16.mxu1 %v2347_v59  ;;  %1867 = vmatpush1.bf16.msra.mxu0 %v2572_v56  ;;  %v2573_v59 = vld [vmem:[#allocation5 + $0x24] ss:$8 sps:$4 sm:$0xff]   ;;  %v2270_v56 = vcombine.low %v120_v47, %v124_v48 }
  0x6f   :  { %1868 = vmatprep.subr.bf16.mxu0 %v2573_v59  ;;  %v136_v59 = vld [vmem:[#allocation2 + $0x150] sm:$0xff] }
  0x71   :  { %931 = vmatpush1.bf16.msra.mxu1 %v2346_v60  ;;  %v183_v60 = vld [vmem:[#allocation2 + $0x2c8] sm:$0xff] }
  0x72   :  { %932 = vmatprep.subr.bf16.mxu1 %v2355_v63  ;;  %v2324_v63 = vcombine.low %v175_v54, %v179_v55  ;;  %1869 = vmatpush1.bf16.msra.mxu0 %v2575_v62  ;;  %v132_v54 = vld [vmem:[#allocation2 + $0x130] sm:$0xff]  ;;  %v2603_v55 = vld [vmem:[#allocation5 + $0xc4] ss:$8 sps:$4 sm:$0xff]  }
  0x73   :  { %1870 = vmatprep.subr.bf16.mxu0 %v2576_v1  ;;  %v2278_v62 = vcombine.low %v128_v53, %v132_v54  ;;  %v144_v1 = vld [vmem:[#allocation2 + $0x190] sm:$0xff] }
  0x75   :  { %933 = vmatpush1.bf16.msra.mxu1 %v2354_v0  ;;  %v2333_v0 = vcombine.high %v183_v60, %v187_v61 }
  0x76   :  { %934 = vmatprep.subr.bf16.mxu1 %v2363_v3  ;;  %v195_v3 = vld [vmem:[#allocation2 + $0x328] sm:$0xff] }
  0x77   :  { %v2340_v11 = vcombine.low %v191_v2, %v195_v3 }
  0x79   :  { %935 = vmatpush1.bf16.msra.mxu1 %v2362_v4  ;;  %v2578_v4 = vld [vmem:[#allocation5 + $0x30] ss:$8 sps:$4 sm:$0xff]  }
  0x7a   :  { %945 = vmatprep.subr.bf16.mxu1 %v2245_v5  ;;  %v2332_v5 = vcombine.low %v183_v60, %v187_v61  ;;  %1871 = vmatpush1.bf16.msra.mxu0 %v2578_v4  ;;  %v140_v60 = vld [vmem:[#allocation2 + $0x170] sm:$0xff] }
  0x7b   :  { %v2606_v61 = vld [vmem:[#allocation5 + $0xd4] ss:$8 sps:$4 sm:$0xff]  }
  0xac   :  { %v2562_v7 = vpop.permute.xlu0 %2561 }
  0xad   :  { %v2564_v9 = vunpack.i.h.bf16 %v2562_v7  ;;  %v2563_v10 = vunpack.i.l.bf16 %v2562_v7  ;;  %v2579_v7 = vld [vmem:[#allocation5 + $0x44] ss:$8 sps:$4 sm:$0xff]  }
  0xae   :  { %1872 = vmatprep.subr.bf16.mxu0 %v2579_v7  ;;  %v156_v7 = vld [vmem:[#allocation2 + $0x1f0] sm:$0xff] }
  0xaf   :  { %v90_v13 = vsel %vm89_vm0, %v77_v8, %v2564_v9  ;;  %v91_v14 = vsel %vm89_vm0, %v79_v6, %v2563_v10  ;;  %v2341_v6 = vcombine.high %v191_v2, %v195_v3  ;;  %v199_v8 = vld [vmem:[#allocation2 + $0x348] sm:$0xff]  ;;  %v148_v2 = vld [vmem:[#allocation2 + $0x1b0] sm:$0xff]  ;;  %v2286_v3 = vcombine.low %v136_v59, %v140_v60 }
  0xb0   :  { %v2944_v15 = vpack.c.bf16 %v90_v13, %v90_v13  ;;  %v2946_v16 = vpack.c.bf16 %v91_v14, %v91_v14  ;;  %v203_v9 = vld [vmem:[#allocation2 + $0x368] sm:$0xff]  ;;  %v2582_v13 = vld [vmem:[#allocation5 + $0x54] ss:$8 sps:$4 sm:$0xff]   ;;  %v2295_v4 = vcombine.high %v144_v1, %v148_v2 }
  0xb1   :  { %v2581_v10 = vld [vmem:[#allocation5 + $0x40] ss:$8 sps:$4 sm:$0xff]   ;;  %v2349_v12 = vcombine.high %v199_v8, %v203_v9  ;;  %v2348_v19 = vcombine.low %v199_v8, %v203_v9  ;;  %v2294_v9 = vcombine.low %v144_v1, %v148_v2  ;;  %v133_v1 = vld [vmem:[#allocation2 + $0x138] sm:$0xff] }
  0xb2   :  { %936 = vmatprep.mubr.bf16.mxu1 %v2946_v16  ;;  %1873 = vmatpush1.bf16.msra.mxu0 %v2581_v10  ;;  %v207_v14 = vld [vmem:[#allocation2 + $0x388] sm:$0xff] }
  0xb3   :  { %937 = vmatmul.mubr.bf16.vlgmr.msra.gmra.mrb[0].mxu1 %v2944_v15  ;;  %1874 = vmatprep.subr.bf16.mxu0 %v2582_v13  ;;  %v2611_v8 = vld [vmem:[#allocation5 + $0xe0] ss:$8 sps:$4 sm:$0xff]   ;;  %v164_v13 = vld [vmem:[#allocation2 + $0x230] sm:$0xff] }
  0xb4   :  { %946 = vmatpush1.bf16.msra.mxu1 %v2244_v17  ;;  %977 = vmatprep.mubr.bf16.mxu1 %v2946_v16  ;;  %v211_v17 = vld [vmem:[#allocation2 + $0x3a8] sm:$0xff] }
  0xb5   :  { %947 = vmatprep.subr.bf16.mxu1 %v2253_v18  ;;  %v2584_v18 = vld [vmem:[#allocation5 + $0x50] ss:$8 sps:$4 sm:$0xff]   ;;  %v2357_v20 = vcombine.high %v207_v14, %v211_v17 }
  0xb6   :  { %1875 = vmatpush1.bf16.msra.mxu0 %v2584_v18 }
  0xb8   :  { %948 = vmatpush1.bf16.msra.mxu1 %v2252_v21  ;;  %v2585_v21 = vld [vmem:[#allocation5 + $0x64] ss:$8 sps:$4 sm:$0xff]  }
  0xb9   :  { %949 = vmatprep.subr.bf16.mxu1 %v2261_v22  ;;  %v215_v22 = vld [vmem:[#allocation2 + $0x3c8] sm:$0xff]  ;;  %1876 = vmatprep.subr.bf16.mxu0 %v2585_v21  ;;  %v172_v21 = vld [vmem:[#allocation2 + $0x270] sm:$0xff] }
  0xba   :  { %1877 = vmatpush1.bf16.msra.mxu0 %v2587_v24  ;;  %v2364_v31 = vcombine.low %v215_v22, %v219_v23  ;;  %v176_v24 = vld [vmem:[#allocation2 + $0x290] sm:$0xff] }
  0xbb   :  { %1878 = vmatprep.subr.bf16.mxu0 %v2588_v27 }
  0xbc   :  { %950 = vmatpush1.bf16.msra.mxu1 %v2260_v25  ;;  %v2356_v25 = vcombine.low %v207_v14, %v211_v17  ;;  %v2614_v14 = vld [vmem:[#allocation5 + $0xf0] ss:$8 sps:$4 sm:$0xff]  }
  0xbd   :  { %951 = vmatprep.subr.bf16.mxu1 %v2269_v26  ;;  %v2365_v26 = vcombine.high %v215_v22, %v219_v23 }
  0xc0   :  { %952 = vmatpush1.bf16.msra.mxu1 %v2268_v29  ;;  %v100_v29 = vld [vmem:[#allocation2 + $0x30] sm:$0xff] }
  0xc1   :  { %953 = vmatprep.subr.bf16.mxu1 %v2277_v30  ;;  %v2590_v30 = vld [vmem:[#allocation5 + $0x70] ss:$8 sps:$4 sm:$0xff]   ;;  %v2247_v32 = vcombine.high %v96_v28, %v100_v29 }
  0xc2   :  { %1879 = vmatpush1.bf16.msra.mxu0 %v2590_v30 }
  0xc4   :  { %954 = vmatpush1.bf16.msra.mxu1 %v2276_v33  ;;  %v2591_v33 = vld [vmem:[#allocation5 + $0x84] ss:$8 sps:$4 sm:$0xff]  }
  0xc5   :  { %955 = vmatprep.subr.bf16.mxu1 %v2285_v34  ;;  %v104_v34 = vld [vmem:[#allocation2 + $0x50] sm:$0xff]  ;;  %1880 = vmatprep.subr.bf16.mxu0 %v2591_v33 }
  0xc6   :  { %1881 = vmatpush1.bf16.msra.mxu0 %v2593_v36  ;;  %v2254_v44 = vcombine.low %v104_v34, %v108_v35  ;;  %v196_v33 = vld [vmem:[#allocation2 + $0x330] sm:$0xff] }
  0xc7   :  { %1882 = vmatprep.subr.bf16.mxu0 %v2594_v39  ;;  %v200_v36 = vld [vmem:[#allocation2 + $0x350] sm:$0xff] }
  0xc8   :  { %956 = vmatpush1.bf16.msra.mxu1 %v2284_v37  ;;  %v2246_v37 = vcombine.low %v96_v28, %v100_v29  ;;  %v184_v28 = vld [vmem:[#allocation2 + $0x2d0] sm:$0xff] }
  0xc9   :  { %957 = vmatprep.subr.bf16.mxu1 %v2293_v38  ;;  %v2255_v38 = vcombine.high %v104_v34, %v108_v35  ;;  %v188_v29 = vld [vmem:[#allocation2 + $0x2f0] sm:$0xff] }
  0xca   :  { %v2334_v34 = vcombine.low %v184_v28, %v188_v29 }
  0xcc   :  { %958 = vmatpush1.bf16.msra.mxu1 %v2292_v41  ;;  %v116_v41 = vld [vmem:[#allocation2 + $0xb0] sm:$0xff] }
  0xcd   :  { %959 = vmatprep.subr.bf16.mxu1 %v2301_v42  ;;  %v2596_v42 = vld [vmem:[#allocation5 + $0x90] ss:$8 sps:$4 sm:$0xff]   ;;  %v2262_v50 = vcombine.low %v112_v40, %v116_v41 }
  0xce   :  { %1883 = vmatpush1.bf16.msra.mxu0 %v2596_v42 }
  0xcf   :  { %1884 = vmatprep.subr.bf16.mxu0 %v2597_v43 }
  0xd0   :  { %960 = vmatpush1.bf16.msra.mxu1 %v2300_v45  ;;  %v2263_v45 = vcombine.high %v112_v40, %v116_v41  ;;  %v208_v40 = vld [vmem:[#allocation2 + $0x390] sm:$0xff] }
  0xd1   :  { %961 = vmatprep.subr.bf16.mxu1 %v2309_v46  ;;  %v2599_v46 = vld [vmem:[#allocation5 + $0xa0] ss:$8 sps:$4 sm:$0xff]   ;;  %v212_v41 = vld [vmem:[#allocation2 + $0x3b0] sm:$0xff] }
  0xd2   :  { %1885 = vmatpush1.bf16.msra.mxu0 %v2599_v46  ;;  %v2359_v43 = vcombine.high %v208_v40, %v212_v41  ;;  %v2358_v46 = vcombine.low %v208_v40, %v212_v41  ;;  %v209_v41 = vld [vmem:[#allocation2 + $0x398] sm:$0xff] }
  0xd3   :  { %1886 = vmatprep.subr.bf16.mxu0 %v2600_v49  ;;  %v101_v49 = vld [vmem:[#allocation2 + $0x38] sm:$0xff] }
  0xd4   :  { %962 = vmatpush1.bf16.msra.mxu1 %v2308_v51  ;;  %v2271_v51 = vcombine.high %v120_v47, %v124_v48  ;;  %v97_v48 = vld [vmem:[#allocation2 + $0x18] sm:$0xff] }
  0xd5   :  { %963 = vmatprep.subr.bf16.mxu1 %v2317_v52  ;;  %v2602_v52 = vld [vmem:[#allocation5 + $0xb0] ss:$8 sps:$4 sm:$0xff]  }
  0xd6   :  { %1887 = vmatpush1.bf16.msra.mxu0 %v2602_v52  ;;  %v105_v52 = vld [vmem:[#allocation2 + $0x58] sm:$0xff] }
  0xd7   :  { %1888 = vmatprep.subr.bf16.mxu0 %v2603_v55 }
  0xd8   :  { %964 = vmatpush1.bf16.msra.mxu1 %v2316_v57  ;;  %v2279_v57 = vcombine.high %v128_v53, %v132_v54  ;;  %v109_v53 = vld [vmem:[#allocation2 + $0x78] sm:$0xff]  ;;  %v2248_v54 = vcombine.low %v97_v48, %v101_v49 }
  0xd9   :  { %965 = vmatprep.subr.bf16.mxu1 %v2325_v58  ;;  %v2605_v58 = vld [vmem:[#allocation5 + $0xc0] ss:$8 sps:$4 sm:$0xff]   ;;  %v2257_v55 = vcombine.high %v105_v52, %v109_v53 }
  0xda   :  { %1889 = vmatpush1.bf16.msra.mxu0 %v2605_v58  ;;  %v2256_v58 = vcombine.low %v105_v52, %v109_v53  ;;  %v2963_v53 = vld [vmem:[%s3048_s5] sm:$0xff] }
  0xdb   :  { %1890 = vmatprep.subr.bf16.mxu0 %v2606_v61  ;;  %v125_v61 = vld [vmem:[#allocation2 + $0xf8] sm:$0xff] }
  0xdc   :  { %966 = vmatpush1.bf16.msra.mxu1 %v2324_v63  ;;  %v2287_v63 = vcombine.high %v136_v59, %v140_v60  ;;  %v121_v60 = vld [vmem:[#allocation2 + $0xd8] sm:$0xff] }
  0xdd   :  { %967 = vmatprep.subr.bf16.mxu1 %v2333_v0  ;;  %v2608_v0 = vld [vmem:[#allocation5 + $0xd0] ss:$8 sps:$4 sm:$0xff]   ;;  %v2272_v2 = vcombine.low %v121_v60, %v125_v61 }
  0xde   :  { %1891 = vmatpush1.bf16.msra.mxu0 %v2608_v0  ;;  %v129_v0 = vld [vmem:[#allocation2 + $0x118] sm:$0xff] }
  0xe0   :  { %968 = vmatpush1.bf16.msra.mxu1 %v2332_v5  ;;  %v2609_v5 = vld [vmem:[#allocation5 + $0xe4] ss:$8 sps:$4 sm:$0xff]  }
  0xe1   :  { %969 = vmatprep.subr.bf16.mxu1 %v2341_v6  ;;  %v152_v6 = vld [vmem:[#allocation2 + $0x1d0] sm:$0xff]  ;;  %1892 = vmatprep.subr.bf16.mxu0 %v2609_v5  ;;  %v141_v5 = vld [vmem:[#allocation2 + $0x178] sm:$0xff] }
  0xe2   :  { %v2303_v10 = vcombine.high %v152_v6, %v156_v7  ;;  %1893 = vmatpush1.bf16.msra.mxu0 %v2611_v8  ;;  %v2302_v17 = vcombine.low %v152_v6, %v156_v7  ;;  %v2280_v6 = vcombine.low %v129_v0, %v133_v1  ;;  %v145_v7 = vld [vmem:[#allocation2 + $0x198] sm:$0xff] }
  0xe3   :  { %v149_v8 = vld [vmem:[#allocation2 + $0x1b8] sm:$0xff] }
  0xe4   :  { %970 = vmatpush1.bf16.msra.mxu1 %v2340_v11  ;;  %v2612_v11 = vld [vmem:[#allocation5 + $0xf4] ss:$8 sps:$4 sm:$0xff]  }
  0xe5   :  { %971 = vmatprep.subr.bf16.mxu1 %v2349_v12  ;;  %v160_v12 = vld [vmem:[#allocation2 + $0x210] sm:$0xff]  ;;  %1894 = vmatprep.subr.bf16.mxu0 %v2612_v11  ;;  %v153_v11 = vld [vmem:[#allocation2 + $0x1d8] sm:$0xff] }
  0xe6   :  { %v2311_v18 = vcombine.high %v160_v12, %v164_v13  ;;  %1895 = vmatpush1.bf16.msra.mxu0 %v2614_v14  ;;  %v2310_v22 = vcombine.low %v160_v12, %v164_v13  ;;  %v157_v12 = vld [vmem:[#allocation2 + $0x1f8] sm:$0xff]  ;;  %v2296_v13 = vcombine.low %v145_v7, %v149_v8 }
  0xe7   :  { %v2305_v14 = vcombine.high %v153_v11, %v157_v12 }
  0xe8   :  { %972 = vmatpush1.bf16.msra.mxu1 %v2348_v19  ;;  %v2617_v19 = vld [vmem:[#allocation5 + $0x104] ss:$8 sps:$4 sm:$0xff]  }
  0xe9   :  { %973 = vmatprep.subr.bf16.mxu1 %v2357_v20  ;;  %v168_v20 = vld [vmem:[#allocation2 + $0x250] sm:$0xff]  ;;  %1905 = vmatprep.subr.bf16.mxu0 %v2617_v19  ;;  %v2304_v19 = vcombine.low %v153_v11, %v157_v12  ;;  %v2635_v12 = vld [vmem:[#allocation5 + $0x164] ss:$8 sps:$4 sm:$0xff]  }
  0xea   :  { %v2319_v23 = vcombine.high %v168_v20, %v172_v21  ;;  %v2630_v11 = vld [vmem:[#allocation5 + $0x150] ss:$8 sps:$4 sm:$0xff]  }
  0xec   :  { %974 = vmatpush1.bf16.msra.mxu1 %v2356_v25  ;;  %v180_v25 = vld [vmem:[#allocation2 + $0x2b0] sm:$0xff] }
  0xed   :  { %975 = vmatprep.subr.bf16.mxu1 %v2365_v26  ;;  %v2318_v26 = vcombine.low %v168_v20, %v172_v21  ;;  %v2327_v27 = vcombine.high %v176_v24, %v180_v25  ;;  %v2326_v30 = vcombine.low %v176_v24, %v180_v25  ;;  %v169_v21 = vld [vmem:[#allocation2 + $0x258] sm:$0xff] }
  0xee   :  { %v177_v25 = vld [vmem:[#allocation2 + $0x298] sm:$0xff] }
  0xf0   :  { %976 = vmatpush1.bf16.msra.mxu1 %v2364_v31  ;;  %v2335_v31 = vcombine.high %v184_v28, %v188_v29  ;;  %v185_v29 = vld [vmem:[#allocation2 + $0x2d8] sm:$0xff] }
  0xf1   :  { %986 = vmatprep.subr.bf16.mxu1 %v2247_v32  ;;  %v192_v32 = vld [vmem:[#allocation2 + $0x310] sm:$0xff] }
  0xf2   :  { %v2343_v35 = vcombine.high %v192_v32, %v196_v33 }
  0xf3   :  { %978 = vmatmul.mubr.bf16.vlgmr.msra.gmra.mrb[4].mxu1 %v2944_v15 }
  0xf4   :  { %987 = vmatpush1.bf16.msra.mxu1 %v2246_v37  ;;  %1018 = vmatprep.mubr.bf16.mxu1 %v2946_v16  ;;  %v204_v37 = vld [vmem:[#allocation2 + $0x370] sm:$0xff] }
  0xf5   :  { %988 = vmatprep.subr.bf16.mxu1 %v2255_v38  ;;  %v2342_v38 = vcombine.low %v192_v32, %v196_v33  ;;  %v2351_v39 = vcombine.high %v200_v36, %v204_v37  ;;  %v2350_v42 = vcombine.low %v200_v36, %v204_v37  ;;  %v193_v33 = vld [vmem:[#allocation2 + $0x318] sm:$0xff] }
  0xf6   :  { %v201_v37 = vld [vmem:[#allocation2 + $0x358] sm:$0xff] }
  0xf8   :  { %989 = vmatpush1.bf16.msra.mxu1 %v2254_v44  ;;  %v216_v44 = vld [vmem:[#allocation2 + $0x3d0] sm:$0xff] }
  0xf9   :  { %990 = vmatprep.subr.bf16.mxu1 %v2263_v45  ;;  %v220_v45 = vld [vmem:[#allocation2 + $0x3f0] sm:$0xff] }
  0xfa   :  { %v2367_v47 = vcombine.high %v216_v44, %v220_v45 }
  0xfc   :  { %991 = vmatpush1.bf16.msra.mxu1 %v2262_v50  ;;  %v2366_v50 = vcombine.low %v216_v44, %v220_v45  ;;  %v217_v45 = vld [vmem:[#allocation2 + $0x3d8] sm:$0xff] }
  0xfd   :  { %992 = vmatprep.subr.bf16.mxu1 %v2271_v51  ;;  %v2249_v51 = vcombine.high %v97_v48, %v101_v49 }
 0x100   :  { %993 = vmatpush1.bf16.msra.mxu1 %v2270_v56  ;;  %v113_v56 = vld [vmem:[#allocation2 + $0x98] sm:$0xff] }
 0x101   :  { %994 = vmatprep.subr.bf16.mxu1 %v2279_v57  ;;  %v117_v57 = vld [vmem:[#allocation2 + $0xb8] sm:$0xff] }
 0x102   :  { %v2265_v59 = vcombine.high %v113_v56, %v117_v57 }
 0x104   :  { %995 = vmatpush1.bf16.msra.mxu1 %v2278_v62  ;;  %v2264_v62 = vcombine.low %v113_v56, %v117_v57 }
 0x105   :  { %996 = vmatprep.subr.bf16.mxu1 %v2287_v63  ;;  %v2273_v63 = vcombine.high %v121_v60, %v125_v61 }
 0x108   :  { %997 = vmatpush1.bf16.msra.mxu1 %v2286_v3  ;;  %v2281_v3 = vcombine.high %v129_v0, %v133_v1  ;;  %v2615_v1 = vld [vmem:[#allocation5 + $0x100] ss:$8 sps:$4 sm:$0xff]  }
 0x109   :  { %998 = vmatprep.subr.bf16.mxu1 %v2295_v4  ;;  %v137_v4 = vld [vmem:[#allocation2 + $0x158] sm:$0xff] }
 0x10c   :  { %999 = vmatpush1.bf16.msra.mxu1 %v2294_v9  ;;  %v2288_v9 = vcombine.low %v137_v4, %v141_v5 }
 0x10d   :  { %1000 = vmatprep.subr.bf16.mxu1 %v2303_v10  ;;  %v2297_v10 = vcombine.high %v145_v7, %v149_v8  ;;  %v2624_v7 = vld [vmem:[#allocation5 + $0x130] ss:$8 sps:$4 sm:$0xff]   ;;  %v2629_v8 = vld [vmem:[#allocation5 + $0x144] ss:$8 sps:$4 sm:$0xff]  }
 0x110   :  { %1001 = vmatpush1.bf16.msra.mxu1 %v2302_v17  ;;  %v161_v17 = vld [vmem:[#allocation2 + $0x218] sm:$0xff] }
 0x111   :  { %1002 = vmatprep.subr.bf16.mxu1 %v2311_v18  ;;  %v165_v18 = vld [vmem:[#allocation2 + $0x238] sm:$0xff] }
 0x112   :  { %v2313_v20 = vcombine.high %v161_v17, %v165_v18 }
 0x114   :  { %1003 = vmatpush1.bf16.msra.mxu1 %v2310_v22  ;;  %v173_v22 = vld [vmem:[#allocation2 + $0x278] sm:$0xff] }
 0x115   :  { %1004 = vmatprep.subr.bf16.mxu1 %v2319_v23  ;;  %v2312_v23 = vcombine.low %v161_v17, %v165_v18  ;;  %v2321_v24 = vcombine.high %v169_v21, %v173_v22  ;;  %v2636_v17 = vld [vmem:[#allocation5 + $0x170] ss:$8 sps:$4 sm:$0xff]   ;;  %v2641_v18 = vld [vmem:[#allocation5 + $0x184] ss:$8 sps:$4 sm:$0xff]  }
 0x118   :  { %1005 = vmatpush1.bf16.msra.mxu1 %v2318_v26  ;;  %v181_v26 = vld [vmem:[#allocation2 + $0x2b8] sm:$0xff] }
 0x119   :  { %1006 = vmatprep.subr.bf16.mxu1 %v2327_v27  ;;  %v2320_v27 = vcombine.low %v169_v21, %v173_v22  ;;  %v2329_v28 = vcombine.high %v177_v25, %v181_v26  ;;  %v2642_v21 = vld [vmem:[#allocation5 + $0x190] ss:$8 sps:$4 sm:$0xff]   ;;  %v2647_v22 = vld [vmem:[#allocation5 + $0x1a4] ss:$8 sps:$4 sm:$0xff]  }
 0x11c   :  { %1007 = vmatpush1.bf16.msra.mxu1 %v2326_v30  ;;  %v189_v30 = vld [vmem:[#allocation2 + $0x2f8] sm:$0xff] }
 0x11d   :  { %1008 = vmatprep.subr.bf16.mxu1 %v2335_v31  ;;  %v2328_v31 = vcombine.low %v177_v25, %v181_v26  ;;  %v2337_v32 = vcombine.high %v185_v29, %v189_v30  ;;  %v2648_v25 = vld [vmem:[#allocation5 + $0x1b0] ss:$8 sps:$4 sm:$0xff]   ;;  %v2653_v26 = vld [vmem:[#allocation5 + $0x1c4] ss:$8 sps:$4 sm:$0xff]  }
 0x120   :  { %1009 = vmatpush1.bf16.msra.mxu1 %v2334_v34  ;;  %v197_v34 = vld [vmem:[#allocation2 + $0x338] sm:$0xff] }
 0x121   :  { %1010 = vmatprep.subr.bf16.mxu1 %v2343_v35  ;;  %v2336_v35 = vcombine.low %v185_v29, %v189_v30  ;;  %v2345_v36 = vcombine.high %v193_v33, %v197_v34  ;;  %v2654_v30 = vld [vmem:[#allocation5 + $0x1d0] ss:$8 sps:$4 sm:$0xff]  }
 0x124   :  { %1011 = vmatpush1.bf16.msra.mxu1 %v2342_v38  ;;  %v205_v38 = vld [vmem:[#allocation2 + $0x378] sm:$0xff] }
 0x125   :  { %1012 = vmatprep.subr.bf16.mxu1 %v2351_v39  ;;  %v2344_v39 = vcombine.low %v193_v33, %v197_v34  ;;  %v2353_v40 = vcombine.high %v201_v37, %v205_v38 }
 0x128   :  { %1013 = vmatpush1.bf16.msra.mxu1 %v2350_v42  ;;  %v213_v42 = vld [vmem:[#allocation2 + $0x3b8] sm:$0xff] }
 0x129   :  { %1014 = vmatprep.subr.bf16.mxu1 %v2359_v43  ;;  %v2352_v43 = vcombine.low %v201_v37, %v205_v38  ;;  %v2361_v44 = vcombine.high %v209_v41, %v213_v42 }
 0x12c   :  { %1015 = vmatpush1.bf16.msra.mxu1 %v2358_v46  ;;  %v221_v46 = vld [vmem:[#allocation2 + $0x3f8] sm:$0xff] }
 0x12d   :  { %1016 = vmatprep.subr.bf16.mxu1 %v2367_v47  ;;  %v2360_v47 = vcombine.low %v209_v41, %v213_v42  ;;  %v2369_v48 = vcombine.high %v217_v45, %v221_v46  ;;  %v2368_v49 = vcombine.low %v217_v45, %v221_v46  ;;  %v2660_v42 = vld [vmem:[#allocation5 + $0x1f0] ss:$8 sps:$4 sm:$0xff]   ;;  %v2665_v45 = vld [vmem:[#allocation5 + $0x204] ss:$8 sps:$4 sm:$0xff]  }
 0x130   :  { %1017 = vmatpush1.bf16.msra.mxu1 %v2366_v50  ;;  %v224_v50 = vlaneseq }
 0x131   :  { %1027 = vmatprep.subr.bf16.mxu1 %v2249_v51 }
 0x132   :  { %v2957_v51 = vshrl.u32 %v224_v50, 7 }
 0x133   :  { %1019 = vmatmul.mubr.bf16.vlgmr.msra.gmra.mrb[8].mxu1 %v2944_v15 }
 0x134   :  { %1028 = vmatpush1.bf16.msra.mxu1 %v2248_v54  ;;  %1059 = vmatprep.mubr.bf16.mxu1 %v2946_v16  ;;  %v2289_v16 = vcombine.high %v137_v4, %v141_v5  ;;  %v226_v52 = vsub.s32 0, %v2957_v51  ;;  %v230_v54 = vsub.s32 1, %v2957_v51  ;;  %v2618_v4 = vld [vmem:[#allocation5 + $0x110] ss:$8 sps:$4 sm:$0xff]   ;;  %v2623_v5 = vld [vmem:[#allocation5 + $0x124] ss:$8 sps:$4 sm:$0xff]  }
 0x135   :  { %1029 = vmatprep.subr.bf16.mxu1 %v2257_v55  ;;  %v234_v29 = vsub.s32 2, %v2957_v51 }
 0x136   :  { %v227_v55 = vrot.slane %v2963_v53, %v226_v52 }
 0x137   :  { %v235_v33 = vrot.slane %v2963_v53, %v234_v29  ;;  %v2702_v29 = vld [vmem:[#allocation5 + $0x2d0] ss:$8 sps:$4 sm:$0xff]  }
 0x138   :  { %1030 = vmatpush1.bf16.msra.mxu1 %v2256_v58 }
 0x139   :  { %1031 = vmatprep.subr.bf16.mxu1 %v2265_v59 }
 0x13c   :  { %1032 = vmatpush1.bf16.msra.mxu1 %v2264_v62 }
 0x13d   :  { %1033 = vmatprep.subr.bf16.mxu1 %v2273_v63 }
 0x140   :  { %1034 = vmatpush1.bf16.msra.mxu1 %v2272_v2 }
 0x141   :  { %1035 = vmatprep.subr.bf16.mxu1 %v2281_v3  ;;  %v2620_v3 = vld [vmem:[#allocation5 + $0x114] ss:$8 sps:$4 sm:$0xff]  }
 0x144   :  { %1036 = vmatpush1.bf16.msra.mxu1 %v2280_v6  ;;  %v2621_v6 = vld [vmem:[#allocation5 + $0x120] ss:$8 sps:$4 sm:$0xff]  }
 0x145   :  { %1037 = vmatprep.subr.bf16.mxu1 %v2289_v16  ;;  %v2626_v16 = vld [vmem:[#allocation5 + $0x134] ss:$8 sps:$4 sm:$0xff]  }
 0x148   :  { %1038 = vmatpush1.bf16.msra.mxu1 %v2288_v9  ;;  %v2627_v9 = vld [vmem:[#allocation5 + $0x140] ss:$8 sps:$4 sm:$0xff]  }
 0x149   :  { %1039 = vmatprep.subr.bf16.mxu1 %v2297_v10  ;;  %v2632_v10 = vld [vmem:[#allocation5 + $0x154] ss:$8 sps:$4 sm:$0xff]  }
 0x14c   :  { %1040 = vmatpush1.bf16.msra.mxu1 %v2296_v13  ;;  %v2633_v13 = vld [vmem:[#allocation5 + $0x160] ss:$8 sps:$4 sm:$0xff]  }
 0x14d   :  { %1041 = vmatprep.subr.bf16.mxu1 %v2305_v14  ;;  %v2638_v14 = vld [vmem:[#allocation5 + $0x174] ss:$8 sps:$4 sm:$0xff]  }
 0x150   :  { %1042 = vmatpush1.bf16.msra.mxu1 %v2304_v19  ;;  %v2639_v19 = vld [vmem:[#allocation5 + $0x180] ss:$8 sps:$4 sm:$0xff]  }
 0x151   :  { %1043 = vmatprep.subr.bf16.mxu1 %v2313_v20  ;;  %v2644_v20 = vld [vmem:[#allocation5 + $0x194] ss:$8 sps:$4 sm:$0xff]  }
 0x154   :  { %1044 = vmatpush1.bf16.msra.mxu1 %v2312_v23  ;;  %v2645_v23 = vld [vmem:[#allocation5 + $0x1a0] ss:$8 sps:$4 sm:$0xff]  }
 0x155   :  { %1045 = vmatprep.subr.bf16.mxu1 %v2321_v24  ;;  %v2650_v24 = vld [vmem:[#allocation5 + $0x1b4] ss:$8 sps:$4 sm:$0xff]  }
 0x158   :  { %1046 = vmatpush1.bf16.msra.mxu1 %v2320_v27  ;;  %v2651_v27 = vld [vmem:[#allocation5 + $0x1c0] ss:$8 sps:$4 sm:$0xff]  }
 0x159   :  { %1047 = vmatprep.subr.bf16.mxu1 %v2329_v28  ;;  %v2656_v28 = vld [vmem:[#allocation5 + $0x1d4] ss:$8 sps:$4 sm:$0xff]  }
 0x15c   :  { %1048 = vmatpush1.bf16.msra.mxu1 %v2328_v31  ;;  %v238_v31 = vsub.s32 3, %v2957_v51 }
 0x15d   :  { %1049 = vmatprep.subr.bf16.mxu1 %v2337_v32  ;;  %v2659_v32 = vld [vmem:[#allocation5 + $0x1e4] ss:$8 sps:$4 sm:$0xff]  }
 0x15e   :  { %v239_v34 = vrot.slane %v2963_v53, %v238_v31  ;;  %v2707_v31 = vld [vmem:[#allocation5 + $0x2e4] ss:$8 sps:$4 sm:$0xff]  }
 0x160   :  { %1050 = vmatpush1.bf16.msra.mxu1 %v2336_v35  ;;  %v2657_v35 = vld [vmem:[#allocation5 + $0x1e0] ss:$8 sps:$4 sm:$0xff]  }
 0x161   :  { %1051 = vmatprep.subr.bf16.mxu1 %v2345_v36  ;;  %v2662_v36 = vld [vmem:[#allocation5 + $0x1f4] ss:$8 sps:$4 sm:$0xff]  }
 0x164   :  { %1052 = vmatpush1.bf16.msra.mxu1 %v2344_v39 }
 0x165   :  { %1053 = vmatprep.subr.bf16.mxu1 %v2353_v40 }
 0x168   :  { %1054 = vmatpush1.bf16.msra.mxu1 %v2352_v43 }
 0x169   :  { %1055 = vmatprep.subr.bf16.mxu1 %v2361_v44 }
 0x16c   :  { %1056 = vmatpush1.bf16.msra.mxu1 %v2360_v47 }
 0x16d   :  { %1057 = vmatprep.subr.bf16.mxu1 %v2369_v48  ;;  %v2663_v48 = vld [vmem:[#allocation5 + $0x200] ss:$8 sps:$4 sm:$0xff]  }
 0x170   :  { %1058 = vmatpush1.bf16.msra.mxu1 %v2368_v49 }
 0x173   :  { %1060 = vmatmul.mubr.bf16.vlgmr.msra.gmra.mrb[12].mxu1 %v2944_v15  ;;  %v231_v15 = vrot.slane %v2963_v53, %v230_v54 }
 0x186   :  { %v938_v56 = vpop.f32.mrb[0].mxu1 }
 0x187   :  { %v939_v57 = vadd.f32 %v938_v56, %v227_v55  ;;  %v940_v58 = vpop.f32.mrb[1].mxu1  ;;  %v2668_v55 = vld [vmem:[#allocation5 + $0x214] ss:$8 sps:$4 sm:$0xff]   ;;  %v2760_v56 = vld [vmem:[%s3051_s8] sm:$0xff]  }
 0x188   :  { %v941_v59 = vadd.f32 %v940_v58, %v231_v15  ;;  %v942_v60 = vpop.f32.mrb[2].mxu1  ;;  %v2759_v15 = vld [vmem:[%s3051_s8 + $0x40] sm:$0xff]   ;;  %v2666_v58 = vld [vmem:[#allocation5 + $0x210] ss:$8 sps:$4 sm:$0xff]  }
 0x189   :  { %v1068_v61 = vmax.f32 %v939_v57, 0.0  ;;  %v943_v62 = vpop.f32.mrb[3].mxu1  ;;  %v2761_v57 = vld [vmem:[%s3051_s8 + $0x48] sm:$0xff]   ;;  %2515 = vmatprep.subr.bf16.mxu1 %v2759_v15 }
 0x18a   :  { %v1069_v63 = vmax.f32 %v941_v59, 0.0  ;;  %v2671_v59 = vld [vmem:[#allocation5 + $0x224] ss:$8 sps:$4 sm:$0xff]   ;;  %2516 = vmatpush3.bf16.msra.mxu1 %v2760_v56  ;;  %v2669_v62 = vld [vmem:[#allocation5 + $0x220] ss:$8 sps:$4 sm:$0xff]  }
 0x18b   :  { %v1076_v2 = vpack.c.bf16 %v1068_v61, %v1068_v61  ;;  %v2762_v60 = vld [vmem:[%s3051_s8 + $0x8] sm:$0xff]   ;;  %2517 = vmatprep.subr.bf16.mxu1 %v2761_v57  ;;  %v2763_v61 = vld [vmem:[%s3051_s8 + $0x50] sm:$0xff]  }
 0x18c   :  { %v1077_v0 = vpack.c.bf16 %v1069_v63, %v1069_v63  ;;  %v2674_v63 = vld [vmem:[#allocation5 + $0x234] ss:$8 sps:$4 sm:$0xff]   ;;  %v2719_v15 = vld [vmem:[#allocation5 + $0x324] ss:$8 sps:$4 sm:$0xff]   ;;  %v2717_v56 = vld [vmem:[#allocation5 + $0x320] ss:$8 sps:$4 sm:$0xff]  }
 0x18d   :  { %v2722_v57 = vld [vmem:[#allocation5 + $0x334] ss:$8 sps:$4 sm:$0xff]  }
 0x18e   :  { %1896 = vmatprep.mubr.bf16.mxu0 %v1077_v0  ;;  %2518 = vmatpush3.bf16.msra.mxu1 %v2762_v60  ;;  %v2764_v0 = vld [vmem:[%s3051_s8 + $0x10] sm:$0xff]   ;;  %v2723_v60 = vld [vmem:[#allocation5 + $0x340] ss:$8 sps:$4 sm:$0xff]  }
 0x18f   :  { %1897 = vmatmul.mubr.bf16.vlgmr.msra.gmra.mrb[0].mxu0 %v1076_v2  ;;  %2519 = vmatprep.subr.bf16.mxu1 %v2763_v61  ;;  %v2672_v2 = vld [vmem:[#allocation5 + $0x230] ss:$8 sps:$4 sm:$0xff]   ;;  %v2728_v61 = vld [vmem:[#allocation5 + $0x354] ss:$8 sps:$4 sm:$0xff]  }
 0x190   :  { %1906 = vmatpush1.bf16.msra.mxu0 %v2615_v1  ;;  %v2765_v1 = vld [vmem:[%s3051_s8 + $0x58] sm:$0xff]  }
 0x191   :  { %1907 = vmatprep.subr.bf16.mxu0 %v2620_v3  ;;  %v2677_v3 = vld [vmem:[#allocation5 + $0x244] ss:$8 sps:$4 sm:$0xff]  }
 0x192   :  { %2520 = vmatpush3.bf16.msra.mxu1 %v2764_v0  ;;  %v2729_v0 = vld [vmem:[#allocation5 + $0x360] ss:$8 sps:$4 sm:$0xff]  }
 0x193   :  { %2521 = vmatprep.subr.bf16.mxu1 %v2765_v1  ;;  %v2734_v1 = vld [vmem:[#allocation5 + $0x374] ss:$8 sps:$4 sm:$0xff]  }
 0x194   :  { %1908 = vmatpush1.bf16.msra.mxu0 %v2618_v4  ;;  %v2766_v4 = vld [vmem:[%s3051_s8 + $0x18] sm:$0xff]  }
 0x195   :  { %1909 = vmatprep.subr.bf16.mxu0 %v2623_v5  ;;  %v2767_v5 = vld [vmem:[%s3051_s8 + $0x60] sm:$0xff]  }
 0x196   :  { %2522 = vmatpush3.bf16.msra.mxu1 %v2766_v4  ;;  %v2735_v4 = vld [vmem:[#allocation5 + $0x380] ss:$8 sps:$4 sm:$0xff]  }
 0x197   :  { %2523 = vmatprep.subr.bf16.mxu1 %v2767_v5  ;;  %v2740_v5 = vld [vmem:[#allocation5 + $0x394] ss:$8 sps:$4 sm:$0xff]  }
 0x198   :  { %1910 = vmatpush1.bf16.msra.mxu0 %v2621_v6  ;;  %v2675_v6 = vld [vmem:[#allocation5 + $0x240] ss:$8 sps:$4 sm:$0xff]  }
 0x199   :  { %1911 = vmatprep.subr.bf16.mxu0 %v2626_v16  ;;  %v2680_v16 = vld [vmem:[#allocation5 + $0x254] ss:$8 sps:$4 sm:$0xff]  }
 0x19c   :  { %1912 = vmatpush1.bf16.msra.mxu0 %v2624_v7  ;;  %v2768_v7 = vld [vmem:[%s3051_s8 + $0x20] sm:$0xff]  }
 0x19d   :  { %1913 = vmatprep.subr.bf16.mxu0 %v2629_v8  ;;  %v2769_v8 = vld [vmem:[%s3051_s8 + $0x68] sm:$0xff]   ;;  %2524 = vmatpush3.bf16.msra.mxu1 %v2768_v7 }
 0x19e   :  { %2525 = vmatprep.subr.bf16.mxu1 %v2769_v8  ;;  %v2741_v7 = vld [vmem:[#allocation5 + $0x3a0] ss:$8 sps:$4 sm:$0xff]   ;;  %v2746_v8 = vld [vmem:[#allocation5 + $0x3b4] ss:$8 sps:$4 sm:$0xff]  }
 0x1a0   :  { %1914 = vmatpush1.bf16.msra.mxu0 %v2627_v9  ;;  %v2678_v9 = vld [vmem:[#allocation5 + $0x250] ss:$8 sps:$4 sm:$0xff]  }
 0x1a1   :  { %1915 = vmatprep.subr.bf16.mxu0 %v2632_v10  ;;  %v2683_v10 = vld [vmem:[#allocation5 + $0x264] ss:$8 sps:$4 sm:$0xff]  }
 0x1a4   :  { %1916 = vmatpush1.bf16.msra.mxu0 %v2630_v11  ;;  %v2770_v11 = vld [vmem:[%s3051_s8 + $0x28] sm:$0xff]  }
 0x1a5   :  { %1917 = vmatprep.subr.bf16.mxu0 %v2635_v12  ;;  %v2681_v12 = vld [vmem:[#allocation5 + $0x260] ss:$8 sps:$4 sm:$0xff]   ;;  %2526 = vmatpush3.bf16.msra.mxu1 %v2770_v11 }
 0x1a6   :  { %v2747_v11 = vld [vmem:[#allocation5 + $0x3c0] ss:$8 sps:$4 sm:$0xff]  }
 0x1a8   :  { %1918 = vmatpush1.bf16.msra.mxu0 %v2633_v13  ;;  %v2686_v13 = vld [vmem:[#allocation5 + $0x274] ss:$8 sps:$4 sm:$0xff]  }
 0x1a9   :  { %1919 = vmatprep.subr.bf16.mxu0 %v2638_v14  ;;  %v2684_v14 = vld [vmem:[#allocation5 + $0x270] ss:$8 sps:$4 sm:$0xff]  }
 0x1ac   :  { %1920 = vmatpush1.bf16.msra.mxu0 %v2636_v17  ;;  %v2689_v17 = vld [vmem:[#allocation5 + $0x284] ss:$8 sps:$4 sm:$0xff]  }
 0x1ad   :  { %1921 = vmatprep.subr.bf16.mxu0 %v2641_v18  ;;  %v2687_v18 = vld [vmem:[#allocation5 + $0x280] ss:$8 sps:$4 sm:$0xff]  }
 0x1b0   :  { %1922 = vmatpush1.bf16.msra.mxu0 %v2639_v19  ;;  %v2692_v19 = vld [vmem:[#allocation5 + $0x294] ss:$8 sps:$4 sm:$0xff]  }
 0x1b1   :  { %1923 = vmatprep.subr.bf16.mxu0 %v2644_v20  ;;  %v2690_v20 = vld [vmem:[#allocation5 + $0x290] ss:$8 sps:$4 sm:$0xff]  }
 0x1b4   :  { %1924 = vmatpush1.bf16.msra.mxu0 %v2642_v21  ;;  %v2695_v21 = vld [vmem:[#allocation5 + $0x2a4] ss:$8 sps:$4 sm:$0xff]  }
 0x1b5   :  { %1925 = vmatprep.subr.bf16.mxu0 %v2647_v22  ;;  %v2693_v22 = vld [vmem:[#allocation5 + $0x2a0] ss:$8 sps:$4 sm:$0xff]  }
 0x1b8   :  { %1926 = vmatpush1.bf16.msra.mxu0 %v2645_v23  ;;  %v2698_v23 = vld [vmem:[#allocation5 + $0x2b4] ss:$8 sps:$4 sm:$0xff]  }
 0x1b9   :  { %1927 = vmatprep.subr.bf16.mxu0 %v2650_v24  ;;  %v2696_v24 = vld [vmem:[#allocation5 + $0x2b0] ss:$8 sps:$4 sm:$0xff]  }
 0x1bc   :  { %1928 = vmatpush1.bf16.msra.mxu0 %v2648_v25  ;;  %v2701_v25 = vld [vmem:[#allocation5 + $0x2c4] ss:$8 sps:$4 sm:$0xff]  }
 0x1bd   :  { %1929 = vmatprep.subr.bf16.mxu0 %v2653_v26  ;;  %v2699_v26 = vld [vmem:[#allocation5 + $0x2c0] ss:$8 sps:$4 sm:$0xff]  }
 0x1c0   :  { %1930 = vmatpush1.bf16.msra.mxu0 %v2651_v27  ;;  %v2704_v27 = vld [vmem:[#allocation5 + $0x2d4] ss:$8 sps:$4 sm:$0xff]  }
 0x1c1   :  { %1931 = vmatprep.subr.bf16.mxu0 %v2656_v28  ;;  %v242_v28 = vsub.s32 4, %v2957_v51 }
 0x1c4   :  { %1932 = vmatpush1.bf16.msra.mxu0 %v2654_v30  ;;  %v246_v30 = vsub.s32 5, %v2957_v51 }
 0x1c5   :  { %1933 = vmatprep.subr.bf16.mxu0 %v2659_v32  ;;  %v243_v32 = vrot.slane %v2963_v53, %v242_v28  ;;  %v2756_v28 = vld [vmem:[#allocation5 + $0x3f0] ss:$8 sps:$4 sm:$0xff]  }
 0x1c6   :  { %v979_v37 = vpop.f32.mrb[4].mxu1 }
 0x1c7   :  { %v980_v38 = vadd.f32 %v979_v37, %v235_v33  ;;  %v981_v39 = vpop.f32.mrb[5].mxu1  ;;  %v247_v33 = vrot.slane %v2963_v53, %v246_v30 }
 0x1c8   :  { %v982_v40 = vadd.f32 %v981_v39, %v239_v34  ;;  %v983_v41 = vpop.f32.mrb[6].mxu1  ;;  %1934 = vmatpush1.bf16.msra.mxu0 %v2657_v35  ;;  %v2705_v34 = vld [vmem:[#allocation5 + $0x2e0] ss:$8 sps:$4 sm:$0xff]   ;;  %v2710_v35 = vld [vmem:[#allocation5 + $0x2f4] ss:$8 sps:$4 sm:$0xff]  }
 0x1c9   :  { %v1070_v43 = vmax.f32 %v980_v38, 0.0  ;;  %v984_v44 = vpop.f32.mrb[7].mxu1  ;;  %1935 = vmatprep.subr.bf16.mxu0 %v2662_v36  ;;  %v2708_v41 = vld [vmem:[#allocation5 + $0x2f0] ss:$8 sps:$4 sm:$0xff]  }
 0x1ca   :  { %v1071_v46 = vmax.f32 %v982_v40, 0.0  ;;  %v2713_v44 = vld [vmem:[#allocation5 + $0x304] ss:$8 sps:$4 sm:$0xff]  }
 0x1cb   :  { %v1078_v49 = vpack.c.bf16 %v1070_v43, %v1070_v43 }
 0x1cc   :  { %v1079_v47 = vpack.c.bf16 %v1071_v46, %v1071_v46  ;;  %1936 = vmatpush1.bf16.msra.mxu0 %v2660_v42 }
 0x1cd   :  { %1946 = vmatprep.subr.bf16.mxu0 %v2665_v45 }
 0x1ce   :  { %1937 = vmatprep.mubr.bf16.mxu0 %v1079_v47  ;;  %v2711_v47 = vld [vmem:[#allocation5 + $0x300] ss:$8 sps:$4 sm:$0xff]  }
 0x1cf   :  { %1938 = vmatmul.mubr.bf16.vlgmr.msra.gmra.mrb[0].mxu0 %v1078_v49  ;;  %v2716_v49 = vld [vmem:[#allocation5 + $0x314] ss:$8 sps:$4 sm:$0xff]  }
 0x1d0   :  { %1947 = vmatpush1.bf16.msra.mxu0 %v2663_v48 }
 0x1d1   :  { %1948 = vmatprep.subr.bf16.mxu0 %v2668_v55  ;;  %v2714_v55 = vld [vmem:[#allocation5 + $0x310] ss:$8 sps:$4 sm:$0xff]  }
 0x1d4   :  { %1949 = vmatpush1.bf16.msra.mxu0 %v2666_v58  ;;  %v2720_v58 = vld [vmem:[#allocation5 + $0x330] ss:$8 sps:$4 sm:$0xff]  }
 0x1d5   :  { %1950 = vmatprep.subr.bf16.mxu0 %v2671_v59  ;;  %v2725_v59 = vld [vmem:[#allocation5 + $0x344] ss:$8 sps:$4 sm:$0xff]  }
 0x1d8   :  { %1951 = vmatpush1.bf16.msra.mxu0 %v2669_v62  ;;  %v2726_v62 = vld [vmem:[#allocation5 + $0x350] ss:$8 sps:$4 sm:$0xff]  }
 0x1d9   :  { %1952 = vmatprep.subr.bf16.mxu0 %v2674_v63  ;;  %v2731_v63 = vld [vmem:[#allocation5 + $0x364] ss:$8 sps:$4 sm:$0xff]  }
 0x1dc   :  { %1953 = vmatpush1.bf16.msra.mxu0 %v2672_v2  ;;  %v2732_v2 = vld [vmem:[#allocation5 + $0x370] ss:$8 sps:$4 sm:$0xff]  }
 0x1dd   :  { %1954 = vmatprep.subr.bf16.mxu0 %v2677_v3  ;;  %v2737_v3 = vld [vmem:[#allocation5 + $0x384] ss:$8 sps:$4 sm:$0xff]  }
 0x1e0   :  { %1955 = vmatpush1.bf16.msra.mxu0 %v2675_v6  ;;  %v2738_v6 = vld [vmem:[#allocation5 + $0x390] ss:$8 sps:$4 sm:$0xff]  }
 0x1e1   :  { %1956 = vmatprep.subr.bf16.mxu0 %v2680_v16  ;;  %v2743_v16 = vld [vmem:[#allocation5 + $0x3a4] ss:$8 sps:$4 sm:$0xff]  }
 0x1e4   :  { %1957 = vmatpush1.bf16.msra.mxu0 %v2678_v9  ;;  %v2744_v9 = vld [vmem:[#allocation5 + $0x3b0] ss:$8 sps:$4 sm:$0xff]  }
 0x1e5   :  { %1958 = vmatprep.subr.bf16.mxu0 %v2683_v10  ;;  %v2749_v10 = vld [vmem:[#allocation5 + $0x3c4] ss:$8 sps:$4 sm:$0xff]  }
 0x1e8   :  { %1959 = vmatpush1.bf16.msra.mxu0 %v2681_v12  ;;  %v2752_v12 = vld [vmem:[#allocation5 + $0x3d4] ss:$8 sps:$4 sm:$0xff]  }
 0x1e9   :  { %1960 = vmatprep.subr.bf16.mxu0 %v2686_v13  ;;  %v250_v13 = vsub.s32 6, %v2957_v51 }
 0x1ec   :  { %1961 = vmatpush1.bf16.msra.mxu0 %v2684_v14  ;;  %v2750_v14 = vld [vmem:[#allocation5 + $0x3d0] ss:$8 sps:$4 sm:$0xff]  }
 0x1ed   :  { %1962 = vmatprep.subr.bf16.mxu0 %v2689_v17  ;;  %v254_v17 = vsub.s32 7, %v2957_v51 }
 0x1f0   :  { %1963 = vmatpush1.bf16.msra.mxu0 %v2687_v18  ;;  %v2755_v18 = vld [vmem:[#allocation5 + $0x3e4] ss:$8 sps:$4 sm:$0xff]  }
 0x1f1   :  { %1964 = vmatprep.subr.bf16.mxu0 %v2692_v19  ;;  %v251_v19 = vrot.slane %v2963_v53, %v250_v13 }
 0x1f4   :  { %1965 = vmatpush1.bf16.msra.mxu0 %v2690_v20  ;;  %v255_v20 = vrot.slane %v2963_v53, %v254_v17  ;;  %v2771_v53 = vld [vmem:[%s3051_s8 + $0x70] sm:$0xff]  }
 0x1f5   :  { %1966 = vmatprep.subr.bf16.mxu0 %v2695_v21  ;;  %v2753_v21 = vld [vmem:[#allocation5 + $0x3e0] ss:$8 sps:$4 sm:$0xff]   ;;  %2527 = vmatprep.subr.bf16.mxu1 %v2771_v53 }
 0x1f8   :  { %1967 = vmatpush1.bf16.msra.mxu0 %v2693_v22  ;;  %v2758_v22 = vld [vmem:[#allocation5 + $0x3f4] ss:$8 sps:$4 sm:$0xff]  }
 0x1f9   :  { %1968 = vmatprep.subr.bf16.mxu0 %v2698_v23 }
 0x1fc   :  { %1969 = vmatpush1.bf16.msra.mxu0 %v2696_v24 }
 0x1fd   :  { %1970 = vmatprep.subr.bf16.mxu0 %v2701_v25 }
 0x200   :  { %1971 = vmatpush1.bf16.msra.mxu0 %v2699_v26 }
 0x201   :  { %1972 = vmatprep.subr.bf16.mxu0 %v2704_v27 }
 0x204   :  { %1973 = vmatpush1.bf16.msra.mxu0 %v2702_v29 }
 0x205   :  { %1974 = vmatprep.subr.bf16.mxu0 %v2707_v31 }
 0x206   :  { %v1020_v36 = vpop.f32.mrb[8].mxu1 }
 0x207   :  { %v1021_v37 = vadd.f32 %v1020_v36, %v243_v32  ;;  %v1022_v38 = vpop.f32.mrb[9].mxu1  ;;  %v2774_v36 = vld [vmem:[%s3051_s8 + $0x38] sm:$0xff]  }
 0x208   :  { %v1023_v39 = vadd.f32 %v1022_v38, %v247_v33  ;;  %v1024_v40 = vpop.f32.mrb[10].mxu1  ;;  %1975 = vmatpush1.bf16.msra.mxu0 %v2705_v34  ;;  %v2772_v34 = vld [vmem:[%s3051_s8 + $0x30] sm:$0xff]  }
 0x209   :  { %v1072_v42 = vmax.f32 %v1021_v37, 0.0  ;;  %v1025_v43 = vpop.f32.mrb[11].mxu1  ;;  %1976 = vmatprep.subr.bf16.mxu0 %v2710_v35  ;;  %2528 = vmatpush3.bf16.msra.mxu1 %v2772_v34  ;;  %v2773_v35 = vld [vmem:[%s3051_s8 + $0x78] sm:$0xff]   ;;  %v1212_v37 = vld [vmem:[%s3050_s7] sm:$0x3]  ;;  %s2498_s7 = sld [smem:[#allocation7 + $0x1]] }
 0x20a   :  { %v1073_v45 = vmax.f32 %v1023_v39, 0.0  ;;  %2529 = vmatprep.subr.bf16.mxu1 %v2773_v35  ;;  %v1217_v38 = vrot.slane %v1212_v37, %v226_v52  ;;  %v1221_v39 = vrot.slane %v1212_v37, %v230_v54  ;;  %v2849_v52 = vmov 0  }
 0x20b   :  { %v1080_v48 = vpack.c.bf16 %v1072_v42, %v1072_v42  ;;  %2566 = vset.pattern.permute.xlu1 %v2849_v52  ;;  %2565 = vset.pattern.permute.xlu0 %v2849_v52 }
 0x20c   :  { %v1081_v46 = vpack.c.bf16 %v1073_v45, %v1073_v45  ;;  %1977 = vmatpush1.bf16.msra.mxu0 %v2708_v41  ;;  %v2031_v41 = vstv %s2028_s13 }
 0x20d   :  { %1987 = vmatprep.subr.bf16.mxu0 %v2713_v44  ;;  %2530 = vmatpush3.bf16.msra.mxu1 %v2774_v36 }
 0x20e   :  { %1978 = vmatprep.mubr.bf16.mxu0 %v1081_v46 }
 0x20f   :  { %1979 = vmatmul.mubr.bf16.vlgmr.msra.gmra.mrb[0].mxu0 %v1080_v48  ;;  %v2071_v54 = vstv %s2498_s7 }
 0x210   :  { %1988 = vmatpush1.bf16.msra.mxu0 %v2711_v47 }
 0x211   :  { %1989 = vmatprep.subr.bf16.mxu0 %v2716_v49 }
 0x214   :  { %1990 = vmatpush1.bf16.msra.mxu0 %v2714_v55 }
 0x215   :  { %1991 = vmatprep.subr.bf16.mxu0 %v2719_v15 }
 0x218   :  { %1992 = vmatpush1.bf16.msra.mxu0 %v2717_v56 }
 0x219   :  { %1993 = vmatprep.subr.bf16.mxu0 %v2722_v57 }
 0x21c   :  { %1994 = vmatpush1.bf16.msra.mxu0 %v2720_v58 }
 0x21d   :  { %1995 = vmatprep.subr.bf16.mxu0 %v2725_v59 }
 0x220   :  { %1996 = vmatpush1.bf16.msra.mxu0 %v2723_v60 }
 0x221   :  { %1997 = vmatprep.subr.bf16.mxu0 %v2728_v61 }
 0x224   :  { %1998 = vmatpush1.bf16.msra.mxu0 %v2726_v62 }
 0x225   :  { %1999 = vmatprep.subr.bf16.mxu0 %v2731_v63 }
 0x228   :  { %2000 = vmatpush1.bf16.msra.mxu0 %v2729_v0 }
 0x229   :  { %2001 = vmatprep.subr.bf16.mxu0 %v2734_v1 }
 0x22c   :  { %2002 = vmatpush1.bf16.msra.mxu0 %v2732_v2 }
 0x22d   :  { %2003 = vmatprep.subr.bf16.mxu0 %v2737_v3 }
 0x230   :  { %2004 = vmatpush1.bf16.msra.mxu0 %v2735_v4 }
 0x231   :  { %2005 = vmatprep.subr.bf16.mxu0 %v2740_v5 }
 0x234   :  { %2006 = vmatpush1.bf16.msra.mxu0 %v2738_v6 }
 0x235   :  { %2007 = vmatprep.subr.bf16.mxu0 %v2743_v16 }
 0x238   :  { %2008 = vmatpush1.bf16.msra.mxu0 %v2741_v7 }
 0x239   :  { %2009 = vmatprep.subr.bf16.mxu0 %v2746_v8  ;;  %v2218_v8 = vand.u32 127, %v224_v50 }
 0x23b   :  { %vm2219_vm3 = vcmp.eq.s32.totalorder %v2218_v8, 0 }
 0x23c   :  { %2010 = vmatpush1.bf16.msra.mxu0 %v2744_v9 }
 0x23d   :  { %2011 = vmatprep.subr.bf16.mxu0 %v2749_v10 }
 0x240   :  { %2012 = vmatpush1.bf16.msra.mxu0 %v2747_v11 }
 0x241   :  { %2013 = vmatprep.subr.bf16.mxu0 %v2752_v12 }
 0x244   :  { %2014 = vmatpush1.bf16.msra.mxu0 %v2750_v14 }
 0x245   :  { %2015 = vmatprep.subr.bf16.mxu0 %v2755_v18 }
 0x246   :  { %v1061_v23 = vpop.f32.mrb[12].mxu1 }
 0x247   :  { %v1062_v24 = vadd.f32 %v1061_v23, %v251_v19  ;;  %v1063_v25 = vpop.f32.mrb[13].mxu1 }
 0x248   :  { %v1064_v26 = vadd.f32 %v1063_v25, %v255_v20  ;;  %v1065_v27 = vpop.f32.mrb[14].mxu1  ;;  %2016 = vmatpush1.bf16.msra.mxu0 %v2753_v21 }
 0x249   :  { %v1074_v29 = vmax.f32 %v1062_v24, 0.0  ;;  %v1066_v30 = vpop.f32.mrb[15].mxu1  ;;  %2017 = vmatprep.subr.bf16.mxu0 %v2758_v22 }
 0x24a   :  { %v1075_v31 = vmax.f32 %v1064_v26, 0.0 }
 0x24b   :  { %v1082_v33 = vpack.c.bf16 %v1074_v29, %v1074_v29 }
 0x24c   :  { %v1083_v32 = vpack.c.bf16 %v1075_v31, %v1075_v31  ;;  %2018 = vmatpush1.bf16.msra.mxu0 %v2756_v28 }
 0x24e   :  { %2019 = vmatprep.mubr.bf16.mxu0 %v1083_v32 }
 0x24f   :  { %2020 = vmatmul.mubr.bf16.vlgmr.msra.gmra.mrb[0].mxu0 %v1082_v33 }
 0x322   :  { %v2021_v40 = vpop.f32.mrb[0].mxu0 }
 0x323   :  { %v2537_v42 = vadd.f32 %v2021_v40, %v1217_v38  ;;  %v2023_v43 = vpop.f32.mrb[1].mxu0 }
 0x324   :  { %v2538_v44 = vadd.f32 %v2023_v43, %v1221_v39  ;;  %v2025_v45 = vpop.f32.mrb[2].mxu0 }
 0x325   :  { %vm2029_vm1 = vcmp.ge.f32.partialorder %v2537_v42, 0.0  ;;  %v2032_v46 = vmul.f32 %v2537_v42, %v2031_v41  ;;  %v2026_v47 = vpop.f32.mrb[3].mxu0 }
 0x326   :  { %vm2030_vm2 = vcmp.ge.f32.partialorder %v2538_v44, 0.0  ;;  %v2033_v48 = vmul.f32 %v2538_v44, %v2031_v41 }
 0x327   :  { %v2034_v49 = vsel %vm2029_vm1, %v2537_v42, %v2032_v46 }
 0x328   :  { %v2035_v55 = vsel %vm2030_vm2, %v2538_v44, %v2033_v48  ;;  %v2036_v56 = vpack.c.bf16 %v2034_v49, %v2034_v49 }
 0x329   :  { %v2037_v15 = vpack.c.bf16 %v2035_v55, %v2035_v55 }
 0x32b   :  { %2200 = vmatprep.mubr.bf16.mxu1 %v2037_v15 }
 0x32c   :  { %2201 = vmatmul.mubr.bf16.vlgmr.msra.gmra.mrb[16].mxu1 %v2036_v56 }
 0x3ff   :  { %v2531_v51 = vpop.f32.mrb[16].mxu1 }
 0x400   :  { %v2532_v57 = vpop.f32.mrb[17].mxu1 }
 0x401   :  { %v2533_v58 = vadd.f32 %v2532_v57, %v2531_v51  ;;  %v2534_v59 = vpop.f32.mrb[18].mxu1 }
 0x402   :  { %v2535_v60 = vpop.f32.mrb[19].mxu1 }
 0x403   :  { %v2203_v61 = vadd.f32 %v2533_v58, %v2071_v54 }
 0x405   :  { %v2209_v62 = vand.u32 2147483647, %v2203_v61  ;;  %v2208_v4 = vmax.f32 %v2203_v61, 0.0 }
 0x407   :  { %v2210_v63 = vsub.f32 0.0, %v2209_v62 }
 0x409   :  { %v2211_v0 = vmul.f32 1.442695, %v2210_v63 }
 0x40b   :  { %2775 = vpow2.f32 %v2211_v0 }
 0x415   :  { %v2776_v1 = vpop.eup %2775 }
 0x416   :  { %v2213_v2 = vadd.f32 1.0, %v2776_v1 }
 0x418   :  { %2777 = vlog2.f32 %v2213_v2 }
 0x422   :  { %v2778_v3 = vpop.eup %2777 }
 0x423   :  { %v2215_v5 = vmul.f32 0.6931472, %v2778_v3 }
 0x425   :  { %v2216_v6 = vadd.f32 %v2215_v5, %v2208_v4 }
 0x427   :  { %v2221_v16 = vsub.f32 %v2203_v61, %v2216_v6  ;;  %v2220_v7 = vsub.f32 0.0, %v2216_v6 }
 0x429   :  { %2229 = vperm.xlu1 %2566, %v2221_v16   ;;  %2224 = vperm.xlu0 %2565, %v2220_v7  }
 0x4a8   :  { %v2230_v9 = vpop.permute.xlu1 %2229  ;;  %v2225_v10 = vpop.permute.xlu0 %2224 }
 0x4a9   :  { %v2232_v11 = vsel %vm2219_vm3, %v2225_v10, %v2230_v9 }
 0x4aa   :  { %2234 = vst.msk [vmem:[%s3053_s10] sm:$0xff] %vm2233_vm4, %v2232_v11 }
 0x4ab   :  { %2239 = vsyncpa [#allocation3], 1 }
 0x4ac   :  { %2240 = vsyncpa [#allocation6], 1 }
 0x4ad   :  { %2241 = vsyncpa [#allocation4], 1 }

</bundles_post_ra>
